<compile_context>
chip_gen: v6e
topology: v6e:2x2x1
jax: 0.10.0
libtpu: 0.0.40
codegen_flags: <defaults>
</compile_context>

<pallas_src>
import functools

import jax
import jax.numpy as jnp
import numpy as np
from jax.experimental import pallas as pl
from jax.experimental.pallas import tpu as pltpu

EPS = 1e-5


# --------------------------- hardware-aware knobs --------------------------- #

@functools.lru_cache(maxsize=None)
def _vmem_limit_bytes():
    cap = 128 * 1024 * 1024
    try:
        info = pltpu.get_tpu_info()
        cap = int(getattr(info, "vmem_capacity_bytes", cap))
    except Exception:
        pass
    # ~40 MiB on v7x (64 MiB/TC), 48 MiB on v5e/v6e (128 MiB).
    return int(min(48 * 1024 * 1024, (cap * 5) // 8))


def _pick_tm(m, k, cout, has_residual):
    """Row tile for the 1x1-conv matmuls: target ~2 MiB of activation DMA per
    grid step (amortizes the ~0.35us per-step overhead), capped by VMEM."""
    row_bytes = 2 * (k + cout * (2 if has_residual else 1))   # bf16 in/out(/res)
    tm = (2 * 1024 * 1024) // max(row_bytes, 1)
    w_bytes = 2 * k * cout
    budget = max(_vmem_limit_bytes() // 2 - w_bytes, 64 * 1024)
    tm = min(tm, budget // max(2 * row_bytes, 1))             # x2 for double-buffer
    tm = int(max(128, min(tm, 4096)))
    if tm >= m:
        return m                                              # full-dim block
    return max(8, (tm // 8) * 8)                              # (8,128) constraint


# ----------------------------- Pallas kernels ------------------------------ #

def _matmul_bias_kernel(x_ref, w_ref, b_ref, o_ref, *, relu):
    # (TM, K) bf16 @ (K, Cout) bf16 on the MXU, f32 accumulate, fused bias(+ReLU).
    acc = jnp.dot(x_ref[...], w_ref[...], preferred_element_type=jnp.float32)
    out = acc + b_ref[...]
    if relu:
        out = jnp.maximum(out, 0.0)
    o_ref[...] = out.astype(o_ref.dtype)


def _matmul_bias_add_relu_kernel(x_ref, w_ref, b_ref, r_ref, o_ref):
    # conv3 + bn3 + residual add + ReLU, all fused; bf16 writeback.
    acc = jnp.dot(x_ref[...], w_ref[...], preferred_element_type=jnp.float32)
    out = acc + b_ref[...] + r_ref[...].astype(jnp.float32)
    o_ref[...] = jnp.maximum(out, 0.0).astype(o_ref.dtype)


def _conv3x3_kernel(*refs, stride, tr, wo):
    # refs = (*parity_plane_refs, w_ref, b_ref, o_ref)
    # plane (rp, cp): (PH, PW, C) bf16 holding padded rows rp, rp+s, ... and
    #                 padded cols cp, cp+s, ...   (unit-stride in-kernel reads)
    # w_ref: (9, C, Cout) bf16 (BN scale folded), b_ref: (1, Cout) f32,
    # o_ref: (TR, Wo, Cout) bf16 -> TR output rows of one image per grid step.
    nplanes = stride * stride
    plane_refs = refs[:nplanes]
    w_ref, b_ref, o_ref = refs[nplanes], refs[nplanes + 1], refs[nplanes + 2]
    c = w_ref.shape[1]
    cout = o_ref.shape[-1]

    row0 = pl.program_id(1) * tr
    if tr % 8 == 0:
        row0 = pl.multiple_of(row0, 8)

    acc = jnp.zeros((tr * wo, cout), jnp.float32)
    for dy in range(3):
        roff = dy // stride
        for dx in range(3):
            coff = dx // stride
            p_ref = plane_refs[(dy % stride) * stride + (dx % stride)]
            patch = p_ref[pl.ds(row0 + roff, tr), pl.ds(coff, wo), :]   # (TR,Wo,C)
            acc = acc + jnp.dot(patch.reshape(tr * wo, c), w_ref[dy * 3 + dx],
                                preferred_element_type=jnp.float32)
    out = jnp.maximum(acc + b_ref[...], 0.0)
    o_ref[...] = out.reshape(tr, wo, cout).astype(o_ref.dtype)


# ------------------------------ Pallas wrappers ----------------------------- #

def matmul_bn_act(x, w, b, *, relu, out_dtype, residual=None):
    """x: (M, K) bf16, w: (K, Cout) bf16 (BN scale folded), b: (1, Cout) f32.
    Optional residual: (M, Cout) bf16 -> out = relu(x@w + b + residual)."""
    m, k = x.shape
    cout = w.shape[1]
    tm = _pick_tm(m, k, cout, residual is not None)
    grid = (pl.cdiv(m, tm),)
    in_specs = [
        pl.BlockSpec((tm, k), lambda i: (i, 0)),
        pl.BlockSpec((k, cout), lambda i: (0, 0)),
        pl.BlockSpec((1, cout), lambda i: (0, 0)),
    ]
    args = [x, w, b]
    if residual is None:
        kernel = functools.partial(_matmul_bias_kernel, relu=relu)
    else:
        kernel = _matmul_bias_add_relu_kernel
        in_specs.append(pl.BlockSpec((tm, cout), lambda i: (i, 0)))
        args.append(residual)

    flops = 2 * m * k * cout
    bytes_accessed = int(m * k * 2 + k * cout * 2
                         + m * cout * np.dtype(out_dtype).itemsize
                         + (m * cout * 2 if residual is not None else 0)
                         + 4 * cout)
    return pl.pallas_call(
        kernel,
        out_shape=jax.ShapeDtypeStruct((m, cout), out_dtype),
        grid_spec=pltpu.PrefetchScalarGridSpec(
            num_scalar_prefetch=0,
            grid=grid,
            in_specs=in_specs,
            out_specs=pl.BlockSpec((tm, cout), lambda i: (i, 0)),
        ),
        compiler_params=pltpu.CompilerParams(
            dimension_semantics=("parallel",),
            vmem_limit_bytes=_vmem_limit_bytes()),
        cost_estimate=pl.CostEstimate(flops=flops, transcendentals=0,
                                      bytes_accessed=bytes_accessed),
    )(*args)


def conv3x3_bn_relu(h1, w9, b, stride):
    """3x3 conv (pad=1, stride) + folded-BN bias + ReLU.
    h1: (N, H, W, C) bf16, w9: (9, C, Cout) bf16, b: (1, Cout) f32.
    Returns (N, Ho, Wo, Cout) bf16."""
    n, h, w, c = h1.shape
    cout = w9.shape[-1]
    ho = (h - 1) // stride + 1
    wo = (w - 1) // stride + 1

    # Row tile: enough output rows per step to make the matmul M-dim >= ~256.
    tr = max(1, min(ho, pl.cdiv(256, wo)))
    nrb = pl.cdiv(ho, tr)

    extra = 2 // stride                     # extra rows/cols a tap may reach
    ph = nrb * tr + extra                   # plane rows (covers ragged last block)
    pw = wo + extra                         # plane cols

    # Pad once; the pad fuses into the parity-slice producers below (stride==1
    # yields a single plane == the padded image).  Tap (dy, dx) then reads plane
    # (dy%s, dx%s) at unit-stride offsets (dy//s, dx//s).
    hp = jnp.pad(h1, ((0, 0), (1, ph * stride - h - 1),
                      (1, pw * stride - w - 1), (0, 0)))
    planes_in = [hp[:, rp::stride, cp::stride, :]
                 for rp in range(stride) for cp in range(stride)]

    plane_spec = pl.BlockSpec((None, ph, pw, c), lambda i, r: (i, 0, 0, 0))
    flops = 2 * n * ho * wo * 9 * c * cout
    bytes_accessed = int(stride * stride * n * ph * pw * c * 2
                         + 9 * c * cout * 2 + n * ho * wo * cout * 2 + 4 * cout)
    return pl.pallas_call(
        functools.partial(_conv3x3_kernel, stride=stride, tr=tr, wo=wo),
        out_shape=jax.ShapeDtypeStruct((n, ho, wo, cout), jnp.bfloat16),
        grid_spec=pltpu.PrefetchScalarGridSpec(
            num_scalar_prefetch=0,
            grid=(n, nrb),
            in_specs=[plane_spec] * (stride * stride) + [
                pl.BlockSpec((9, c, cout), lambda i, r: (0, 0, 0)),
                pl.BlockSpec((1, cout), lambda i, r: (0, 0)),
            ],
            out_specs=pl.BlockSpec((None, tr, wo, cout),
                                   lambda i, r: (i, r, 0, 0)),
        ),
        compiler_params=pltpu.CompilerParams(
            dimension_semantics=("parallel", "parallel"),
            vmem_limit_bytes=_vmem_limit_bytes()),
        cost_estimate=pl.CostEstimate(flops=flops, transcendentals=0,
                                      bytes_accessed=bytes_accessed),
    )(*planes_in, w9, b)


# ------------------------------- JAX glue ----------------------------------- #

def fold_bn(gamma, beta, mean, var):
    scale = gamma / jnp.sqrt(var + EPS)
    bias = beta - mean * scale
    return scale, bias


@functools.partial(jax.jit, static_argnames=("stride",))
def bottleneck_forward(x_nchw, params, stride):
    n, cin, h, w = x_nchw.shape
    x = jnp.transpose(x_nchw, (0, 2, 3, 1)).astype(jnp.bfloat16)   # NHWC bf16
    x_rows = x.reshape(n * h * w, cin)

    # conv1 (1x1) + bn1 + relu — BN scale folded into the weight columns.
    s1, bias1 = fold_bn(*params["bn1"])
    w1 = (params["conv1_w"][:, :, 0, 0].T * s1[None, :]).astype(jnp.bfloat16)
    planes = w1.shape[1]
    h1 = matmul_bn_act(x_rows, w1,
                       bias1.reshape(1, planes).astype(jnp.float32),
                       relu=True, out_dtype=jnp.bfloat16)
    h1 = h1.reshape(n, h, w, planes)

    # conv2 (3x3, stride, pad=1) + bn2 + relu — row-tiled, 9 accumulated matmuls.
    s2, bias2 = fold_bn(*params["bn2"])
    w2 = (jnp.transpose(params["conv2_w"], (2, 3, 1, 0))
          .reshape(9, planes, planes) * s2[None, None, :]).astype(jnp.bfloat16)
    h2 = conv3x3_bn_relu(h1, w2,
                         bias2.reshape(1, planes).astype(jnp.float32), stride)
    ho, wo = h2.shape[1], h2.shape[2]
    h2_rows = h2.reshape(n * ho * wo, planes)

    # conv3 weights/bias.
    s3, bias3 = fold_bn(*params["bn3"])
    w3 = (params["conv3_w"][:, :, 0, 0].T * s3[None, :]).astype(jnp.bfloat16)
    cexp = w3.shape[1]

    # Shortcut branch (computed first so it fuses into the conv3 kernel).
    if "sc_w" in params:
        ss, biass = fold_bn(*params["sc_bn"])
        ws = (params["sc_w"][:, :, 0, 0].T * ss[None, :]).astype(jnp.bfloat16)
        xs = x[:, ::stride, ::stride, :].reshape(n * ho * wo, cin)
        sc = matmul_bn_act(xs, ws,
                           biass.reshape(1, cexp).astype(jnp.float32),
                           relu=False, out_dtype=jnp.bfloat16)
    else:
        assert stride == 1 and cin == cexp, (
            "identity shortcut requires stride==1 and in_planes == expansion*planes; "
            f"got stride={stride}, in_planes={cin}, expansion*planes={cexp}")
        sc = x_rows                      # identity path (bf16 residual)

    # conv3 (1x1) + bn3 + residual add + relu, fused in one kernel; bf16 output.
    out = matmul_bn_act(h2_rows, w3,
                        bias3.reshape(1, cexp).astype(jnp.float32),
                        relu=True, out_dtype=jnp.bfloat16, residual=sc)
    out = out.reshape(n, ho, wo, cexp)
    # Final NHWC->NCHW transpose on bf16; convert to f32 at the module boundary.
    return jnp.transpose(out, (0, 3, 1, 2)).astype(jnp.float32)


# ------------------------- pure-JAX reference (NCHW) ------------------------ #

def _conv_ref(x, w, stride=1, padding=0):
    return jax.lax.conv_general_dilated(
        x, w, (stride, stride), [(padding, padding)] * 2,
        dimension_numbers=("NCHW", "OIHW", "NCHW"),
        precision=jax.lax.Precision.HIGHEST)


def _bn_ref(x, gamma, beta, mean, var):
    sh = (1, -1, 1, 1)
    return gamma.reshape(sh) * (x - mean.reshape(sh)) / jnp.sqrt(
        var.reshape(sh) + EPS) + beta.reshape(sh)


def bottleneck_ref(x, params, stride):
    out = jax.nn.relu(_bn_ref(_conv_ref(x, params["conv1_w"]), *params["bn1"]))
    out = jax.nn.relu(_bn_ref(_conv_ref(out, params["conv2_w"], stride, 1),
                              *params["bn2"]))
    out = _bn_ref(_conv_ref(out, params["conv3_w"]), *params["bn3"])
    if "sc_w" in params:
        sc = _bn_ref(_conv_ref(x, params["sc_w"], stride), *params["sc_bn"])
    else:
        sc = x
    return jax.nn.relu(out + sc)


# ----------------------------------- main ----------------------------------- #

def make_params(key, in_planes, planes, stride, expansion=4):
    ks = jax.random.split(key, 16)

    def bn(k, c):
        k1, k2, k3, k4 = jax.random.split(k, 4)
        gamma = 1.0 + 0.1 * jax.random.normal(k1, (c,), jnp.float32)
        beta = 0.1 * jax.random.normal(k2, (c,), jnp.float32)
        mean = 0.1 * jax.random.normal(k3, (c,), jnp.float32)
        var = 0.5 + 0.5 * jnp.abs(jax.random.normal(k4, (c,), jnp.float32))
        return gamma, beta, mean, var

    cexp = expansion * planes
    p = {
        "conv1_w": 0.2 * jax.random.normal(ks[0], (planes, in_planes, 1, 1), jnp.float32),
        "bn1": bn(ks[1], planes),
        "conv2_w": 0.2 * jax.random.normal(ks[2], (planes, planes, 3, 3), jnp.float32),
        "bn2": bn(ks[3], planes),
        "conv3_w": 0.2 * jax.random.normal(ks[4], (cexp, planes, 1, 1), jnp.float32),
        "bn3": bn(ks[5], cexp),
    }
    if stride != 1 or in_planes != cexp:
        p["sc_w"] = 0.2 * jax.random.normal(ks[6], (cexp, in_planes, 1, 1), jnp.float32)
        p["sc_bn"] = bn(ks[7], cexp)
    return p


if __name__ == "__main__":
    key = jax.random.PRNGKey(0)
    k_x, k_p = jax.random.split(key)

    batch, in_planes, planes, stride, spatial = 2, 4, 4, 2, 16
    x = jax.random.normal(k_x, (batch, in_planes, spatial, spatial), jnp.float32)
    params = make_params(k_p, in_planes, planes, stride)

    out = jax.block_until_ready(bottleneck_forward(x, params, stride=stride))
    ref = jax.block_until_ready(bottleneck_ref(x, params, stride))

    assert out.shape == ref.shape, (out.shape, ref.shape)
    # bf16 MXU path + bf16 writeback -> relaxed tolerance vs the f32 reference.
    assert jnp.allclose(out, ref, atol=5e-2, rtol=5e-2), float(
        jnp.max(jnp.abs(out - ref)))

    print("KERNEL_OK")
</pallas_src>

<mosaic_0001>
module attributes {stable_mosaic.version = 11 : i64} {
  func.func @_matmul_bias_kernel(%arg0: i32, %arg1: memref<512x4xbf16, #tpu.memory_space<vmem>>, %arg2: memref<4x4xbf16, #tpu.memory_space<vmem>>, %arg3: memref<1x4xf32, #tpu.memory_space<vmem>>, %arg4: memref<512x4xbf16, #tpu.memory_space<vmem>>) attributes {dimension_semantics = [#tpu.dimension_semantics<parallel>], iteration_bounds = array<i64: 1>, scalar_prefetch = 0 : i64, scratch_operands = 0 : i64, tpu.core_type = #tpu.core_type<tc>, window_params = [{transform_indices = @transform_0, window_bounds = array<i64: 512, 4>}, {pipeline_mode = #tpu.pipeline_mode<synchronous>, transform_indices = @transform_1, window_bounds = array<i64: 4, 4>}, {pipeline_mode = #tpu.pipeline_mode<synchronous>, transform_indices = @transform_2, window_bounds = array<i64: 1, 4>}, {transform_indices = @transform_3, window_bounds = array<i64: 512, 4>}]} {
    %c0 = arith.constant 0 : index
    %c0_0 = arith.constant 0 : index
    %0 = vector.load %arg1[%c0, %c0_0] : memref<512x4xbf16, #tpu.memory_space<vmem>>, vector<512x4xbf16>
    %c0_1 = arith.constant 0 : index
    %c0_2 = arith.constant 0 : index
    %1 = vector.load %arg2[%c0_1, %c0_2] : memref<4x4xbf16, #tpu.memory_space<vmem>>, vector<4x4xbf16>
    %cst = arith.constant dense<0.000000e+00> : vector<512x4xf32>
    %2 = tpu.matmul %0, %1, %cst {dimension_numbers = #tpu.dot_dimension_numbers<[1], [0], [0], [1], [0, 0, 1, 1], [], []>} : vector<512x4xbf16>, vector<4x4xbf16>, vector<512x4xf32> -> vector<512x4xf32>
    %c0_3 = arith.constant 0 : index
    %c0_4 = arith.constant 0 : index
    %3 = vector.load %arg3[%c0_3, %c0_4] : memref<1x4xf32, #tpu.memory_space<vmem>>, vector<1x4xf32>
    %4 = vector.broadcast %3 : vector<1x4xf32> to vector<512x4xf32>
    %5 = arith.addf %2, %4 : vector<512x4xf32>
    %cst_5 = arith.constant 0.000000e+00 : f32
    %6 = vector.broadcast %cst_5 : f32 to vector<512x4xf32>
    %7 = arith.maximumf %5, %6 : vector<512x4xf32>
    %8 = arith.truncf %7 : vector<512x4xf32> to vector<512x4xbf16>
    %c0_6 = arith.constant 0 : index
    %c0_7 = arith.constant 0 : index
    %9 = vector.load %arg4[%c0_6, %c0_7] : memref<512x4xbf16, #tpu.memory_space<vmem>>, vector<512x4xbf16>
    tpu.vector_store %arg4[%c0_6, %c0_7], %8 {strides = array<i32>} : memref<512x4xbf16, #tpu.memory_space<vmem>>, vector<512x4xbf16>,
    return
  }
  func.func @transform_0(%arg0: i32) -> (i32, i32) {
    %c0_i32 = arith.constant 0 : i32
    %c0_i32_0 = arith.constant 0 : i32
    return %arg0, %c0_i32 : i32, i32
  }
  func.func @transform_1(%arg0: i32) -> (i32, i32) {
    %c0_i32 = arith.constant 0 : i32
    %c0_i32_0 = arith.constant 0 : i32
    %c0_i32_1 = arith.constant 0 : i32
    return %c0_i32, %c0_i32_0 : i32, i32
  }
  func.func @transform_2(%arg0: i32) -> (i32, i32) {
    %c0_i32 = arith.constant 0 : i32
    %c0_i32_0 = arith.constant 0 : i32
    %c0_i32_1 = arith.constant 0 : i32
    return %c0_i32, %c0_i32_0 : i32, i32
  }
  func.func @transform_3(%arg0: i32) -> (i32, i32) {
    %c0_i32 = arith.constant 0 : i32
    %c0_i32_0 = arith.constant 0 : i32
    return %arg0, %c0_i32 : i32, i32
  }
}

module attributes {stable_mosaic.version = 11 : i64} {
  func.func @_matmul_bias_kernel(%arg0: i32, %arg1: memref<128x4xbf16, #tpu.memory_space<vmem>>, %arg2: memref<4x16xbf16, #tpu.memory_space<vmem>>, %arg3: memref<1x16xf32, #tpu.memory_space<vmem>>, %arg4: memref<128x16xbf16, #tpu.memory_space<vmem>>) attributes {dimension_semantics = [#tpu.dimension_semantics<parallel>], iteration_bounds = array<i64: 1>, scalar_prefetch = 0 : i64, scratch_operands = 0 : i64, tpu.core_type = #tpu.core_type<tc>, window_params = [{transform_indices = @transform_0, window_bounds = array<i64: 128, 4>}, {pipeline_mode = #tpu.pipeline_mode<synchronous>, transform_indices = @transform_1, window_bounds = array<i64: 4, 16>}, {pipeline_mode = #tpu.pipeline_mode<synchronous>, transform_indices = @transform_2, window_bounds = array<i64: 1, 16>}, {transform_indices = @transform_3, window_bounds = array<i64: 128, 16>}]} {
    %c0 = arith.constant 0 : index
    %c0_0 = arith.constant 0 : index
    %0 = vector.load %arg1[%c0, %c0_0] : memref<128x4xbf16, #tpu.memory_space<vmem>>, vector<128x4xbf16>
    %c0_1 = arith.constant 0 : index
    %c0_2 = arith.constant 0 : index
    %1 = vector.load %arg2[%c0_1, %c0_2] : memref<4x16xbf16, #tpu.memory_space<vmem>>, vector<4x16xbf16>
    %cst = arith.constant dense<0.000000e+00> : vector<128x16xf32>
    %2 = tpu.matmul %0, %1, %cst {dimension_numbers = #tpu.dot_dimension_numbers<[1], [0], [0], [1], [0, 0, 1, 1], [], []>} : vector<128x4xbf16>, vector<4x16xbf16>, vector<128x16xf32> -> vector<128x16xf32>
    %c0_3 = arith.constant 0 : index
    %c0_4 = arith.constant 0 : index
    %3 = vector.load %arg3[%c0_3, %c0_4] : memref<1x16xf32, #tpu.memory_space<vmem>>, vector<1x16xf32>
    %4 = vector.broadcast %3 : vector<1x16xf32> to vector<128x16xf32>
    %5 = arith.addf %2, %4 : vector<128x16xf32>
    %6 = arith.truncf %5 : vector<128x16xf32> to vector<128x16xbf16>
    %c0_5 = arith.constant 0 : index
    %c0_6 = arith.constant 0 : index
    %7 = vector.load %arg4[%c0_5, %c0_6] : memref<128x16xbf16, #tpu.memory_space<vmem>>, vector<128x16xbf16>
    tpu.vector_store %arg4[%c0_5, %c0_6], %6 {strides = array<i32>} : memref<128x16xbf16, #tpu.memory_space<vmem>>, vector<128x16xbf16>,
    return
  }
  func.func @transform_0(%arg0: i32) -> (i32, i32) {
    %c0_i32 = arith.constant 0 : i32
    %c0_i32_0 = arith.constant 0 : i32
    return %arg0, %c0_i32 : i32, i32
  }
  func.func @transform_1(%arg0: i32) -> (i32, i32) {
    %c0_i32 = arith.constant 0 : i32
    %c0_i32_0 = arith.constant 0 : i32
    %c0_i32_1 = arith.constant 0 : i32
    return %c0_i32, %c0_i32_0 : i32, i32
  }
  func.func @transform_2(%arg0: i32) -> (i32, i32) {
    %c0_i32 = arith.constant 0 : i32
    %c0_i32_0 = arith.constant 0 : i32
    %c0_i32_1 = arith.constant 0 : i32
    return %c0_i32, %c0_i32_0 : i32, i32
  }
  func.func @transform_3(%arg0: i32) -> (i32, i32) {
    %c0_i32 = arith.constant 0 : i32
    %c0_i32_0 = arith.constant 0 : i32
    return %arg0, %c0_i32 : i32, i32
  }
}

module attributes {stable_mosaic.version = 11 : i64} {
  func.func @_conv3x3_kernel(%arg0: i32, %arg1: i32, %arg2: memref<1x9x9x4xbf16, #tpu.memory_space<vmem>>, %arg3: memref<1x9x9x4xbf16, #tpu.memory_space<vmem>>, %arg4: memref<1x9x9x4xbf16, #tpu.memory_space<vmem>>, %arg5: memref<1x9x9x4xbf16, #tpu.memory_space<vmem>>, %arg6: memref<9x4x4xbf16, #tpu.memory_space<vmem>>, %arg7: memref<1x4xf32, #tpu.memory_space<vmem>>, %arg8: memref<1x8x8x4xbf16, #tpu.memory_space<vmem>>) attributes {dimension_semantics = [#tpu.dimension_semantics<parallel>, #tpu.dimension_semantics<parallel>], iteration_bounds = array<i64: 2, 1>, scalar_prefetch = 0 : i64, scratch_operands = 0 : i64, tpu.core_type = #tpu.core_type<tc>, window_params = [{transform_indices = @transform_0, window_bounds = array<i64: 1, 9, 9, 4>}, {transform_indices = @transform_1, window_bounds = array<i64: 1, 9, 9, 4>}, {transform_indices = @transform_2, window_bounds = array<i64: 1, 9, 9, 4>}, {transform_indices = @transform_3, window_bounds = array<i64: 1, 9, 9, 4>}, {pipeline_mode = #tpu.pipeline_mode<synchronous>, transform_indices = @transform_4, window_bounds = array<i64: 9, 4, 4>}, {pipeline_mode = #tpu.pipeline_mode<synchronous>, transform_indices = @transform_5, window_bounds = array<i64: 1, 4>}, {transform_indices = @transform_6, window_bounds = array<i64: 1, 8, 8, 4>}]} {
    %c8_i32 = arith.constant 8 : i32
    %0 = arith.muli %arg1, %c8_i32 : i32
    %1 = tpu.assume_multiple %0, 8 : i32
    %cst = arith.constant 0.000000e+00 : f32
    %2 = vector.broadcast %cst : f32 to vector<64x4xf32>
    %c0_i32 = arith.constant 0 : i32
    %3 = arith.addi %1, %c0_i32 : i32
    %c0 = arith.constant 0 : index
    %4 = arith.index_cast %3 : i32 to index
    %c0_0 = arith.constant 0 : index
    %c0_1 = arith.constant 0 : index
    %5 = vector.load %arg2[%c0, %4, %c0_0, %c0_1] : memref<1x9x9x4xbf16, #tpu.memory_space<vmem>>, vector<1x8x8x4xbf16>
    %6 = vector.shape_cast %5 : vector<1x8x8x4xbf16> to vector<8x8x4xbf16>
    %7 = vector.shape_cast %6 : vector<8x8x4xbf16> to vector<64x4xbf16>
    %c0_2 = arith.constant 0 : index
    %c0_3 = arith.constant 0 : index
    %c0_4 = arith.constant 0 : index
    %8 = vector.load %arg6[%c0_2, %c0_3, %c0_4] : memref<9x4x4xbf16, #tpu.memory_space<vmem>>, vector<1x4x4xbf16>
    %9 = vector.shape_cast %8 : vector<1x4x4xbf16> to vector<4x4xbf16>
    %cst_5 = arith.constant dense<0.000000e+00> : vector<64x4xf32>
    %10 = tpu.matmul %7, %9, %cst_5 {dimension_numbers = #tpu.dot_dimension_numbers<[1], [0], [0], [1], [0, 0, 1, 1], [], []>} : vector<64x4xbf16>, vector<4x4xbf16>, vector<64x4xf32> -> vector<64x4xf32>
    %11 = arith.addf %2, %10 : vector<64x4xf32>
    %c0_i32_6 = arith.constant 0 : i32
    %12 = arith.addi %1, %c0_i32_6 : i32
    %c0_7 = arith.constant 0 : index
    %13 = arith.index_cast %12 : i32 to index
    %c0_8 = arith.constant 0 : index
    %c0_9 = arith.constant 0 : index
    %14 = vector.load %arg3[%c0_7, %13, %c0_8, %c0_9] : memref<1x9x9x4xbf16, #tpu.memory_space<vmem>>, vector<1x8x8x4xbf16>
    %15 = vector.shape_cast %14 : vector<1x8x8x4xbf16> to vector<8x8x4xbf16>
    %16 = vector.shape_cast %15 : vector<8x8x4xbf16> to vector<64x4xbf16>
    %c1 = arith.constant 1 : index
    %c0_10 = arith.constant 0 : index
    %c0_11 = arith.constant 0 : index
    %17 = vector.load %arg6[%c1, %c0_10, %c0_11] : memref<9x4x4xbf16, #tpu.memory_space<vmem>>, vector<1x4x4xbf16>
    %18 = vector.shape_cast %17 : vector<1x4x4xbf16> to vector<4x4xbf16>
    %cst_12 = arith.constant dense<0.000000e+00> : vector<64x4xf32>
    %19 = tpu.matmul %16, %18, %cst_12 {dimension_numbers = #tpu.dot_dimension_numbers<[1], [0], [0], [1], [0, 0, 1, 1], [], []>} : vector<64x4xbf16>, vector<4x4xbf16>, vector<64x4xf32> -> vector<64x4xf32>
    %20 = arith.addf %11, %19 : vector<64x4xf32>
    %c0_i32_13 = arith.constant 0 : i32
    %21 = arith.addi %1, %c0_i32_13 : i32
    %c0_14 = arith.constant 0 : index
    %22 = arith.index_cast %21 : i32 to index
    %c1_15 = arith.constant 1 : index
    %c0_16 = arith.constant 0 : index
    %23 = vector.load %arg2[%c0_14, %22, %c1_15, %c0_16] : memref<1x9x9x4xbf16, #tpu.memory_space<vmem>>, vector<1x8x8x4xbf16>
    %24 = vector.shape_cast %23 : vector<1x8x8x4xbf16> to vector<8x8x4xbf16>
    %25 = vector.shape_cast %24 : vector<8x8x4xbf16> to vector<64x4xbf16>
    %c2 = arith.constant 2 : index
    %c0_17 = arith.constant 0 : index
    %c0_18 = arith.constant 0 : index
    %26 = vector.load %arg6[%c2, %c0_17, %c0_18] : memref<9x4x4xbf16, #tpu.memory_space<vmem>>, vector<1x4x4xbf16>
    %27 = vector.shape_cast %26 : vector<1x4x4xbf16> to vector<4x4xbf16>
    %cst_19 = arith.constant dense<0.000000e+00> : vector<64x4xf32>
    %28 = tpu.matmul %25, %27, %cst_19 {dimension_numbers = #tpu.dot_dimension_numbers<[1], [0], [0], [1], [0, 0, 1, 1], [], []>} : vector<64x4xbf16>, vector<4x4xbf16>, vector<64x4xf32> -> vector<64x4xf32>
    %29 = arith.addf %20, %28 : vector<64x4xf32>
    %c0_i32_20 = arith.constant 0 : i32
    %30 = arith.addi %1, %c0_i32_20 : i32
    %c0_21 = arith.constant 0 : index
    %31 = arith.index_cast %30 : i32 to index
    %c0_22 = arith.constant 0 : index
    %c0_23 = arith.constant 0 : index
    %32 = vector.load %arg4[%c0_21, %31, %c0_22, %c0_23] : memref<1x9x9x4xbf16, #tpu.memory_space<vmem>>, vector<1x8x8x4xbf16>
    %33 = vector.shape_cast %32 : vector<1x8x8x4xbf16> to vector<8x8x4xbf16>
    %34 = vector.shape_cast %33 : vector<8x8x4xbf16> to vector<64x4xbf16>
    %c3 = arith.constant 3 : index
    %c0_24 = arith.constant 0 : index
    %c0_25 = arith.constant 0 : index
    %35 = vector.load %arg6[%c3, %c0_24, %c0_25] : memref<9x4x4xbf16, #tpu.memory_space<vmem>>, vector<1x4x4xbf16>
    %36 = vector.shape_cast %35 : vector<1x4x4xbf16> to vector<4x4xbf16>
    %cst_26 = arith.constant dense<0.000000e+00> : vector<64x4xf32>
    %37 = tpu.matmul %34, %36, %cst_26 {dimension_numbers = #tpu.dot_dimension_numbers<[1], [0], [0], [1], [0, 0, 1, 1], [], []>} : vector<64x4xbf16>, vector<4x4xbf16>, vector<64x4xf32> -> vector<64x4xf32>
    %38 = arith.addf %29, %37 : vector<64x4xf32>
    %c0_i32_27 = arith.constant 0 : i32
    %39 = arith.addi %1, %c0_i32_27 : i32
    %c0_28 = arith.constant 0 : index
    %40 = arith.index_cast %39 : i32 to index
    %c0_29 = arith.constant 0 : index
    %c0_30 = arith.constant 0 : index
    %41 = vector.load %arg5[%c0_28, %40, %c0_29, %c0_30] : memref<1x9x9x4xbf16, #tpu.memory_space<vmem>>, vector<1x8x8x4xbf16>
    %42 = vector.shape_cast %41 : vector<1x8x8x4xbf16> to vector<8x8x4xbf16>
    %43 = vector.shape_cast %42 : vector<8x8x4xbf16> to vector<64x4xbf16>
    %c4 = arith.constant 4 : index
    %c0_31 = arith.constant 0 : index
    %c0_32 = arith.constant 0 : index
    %44 = vector.load %arg6[%c4, %c0_31, %c0_32] : memref<9x4x4xbf16, #tpu.memory_space<vmem>>, vector<1x4x4xbf16>
    %45 = vector.shape_cast %44 : vector<1x4x4xbf16> to vector<4x4xbf16>
    %cst_33 = arith.constant dense<0.000000e+00> : vector<64x4xf32>
    %46 = tpu.matmul %43, %45, %cst_33 {dimension_numbers = #tpu.dot_dimension_numbers<[1], [0], [0], [1], [0, 0, 1, 1], [], []>} : vector<64x4xbf16>, vector<4x4xbf16>, vector<64x4xf32> -> vector<64x4xf32>
    %47 = arith.addf %38, %46 : vector<64x4xf32>
    %c0_i32_34 = arith.constant 0 : i32
    %48 = arith.addi %1, %c0_i32_34 : i32
    %c0_35 = arith.constant 0 : index
    %49 = arith.index_cast %48 : i32 to index
    %c1_36 = arith.constant 1 : index
    %c0_37 = arith.constant 0 : index
    %50 = vector.load %arg4[%c0_35, %49, %c1_36, %c0_37] : memref<1x9x9x4xbf16, #tpu.memory_space<vmem>>, vector<1x8x8x4xbf16>
    %51 = vector.shape_cast %50 : vector<1x8x8x4xbf16> to vector<8x8x4xbf16>
    %52 = vector.shape_cast %51 : vector<8x8x4xbf16> to vector<64x4xbf16>
    %c5 = arith.constant 5 : index
    %c0_38 = arith.constant 0 : index
    %c0_39 = arith.constant 0 : index
    %53 = vector.load %arg6[%c5, %c0_38, %c0_39] : memref<9x4x4xbf16, #tpu.memory_space<vmem>>, vector<1x4x4xbf16>
    %54 = vector.shape_cast %53 : vector<1x4x4xbf16> to vector<4x4xbf16>
    %cst_40 = arith.constant dense<0.000000e+00> : vector<64x4xf32>
    %55 = tpu.matmul %52, %54, %cst_40 {dimension_numbers = #tpu.dot_dimension_numbers<[1], [0], [0], [1], [0, 0, 1, 1], [], []>} : vector<64x4xbf16>, vector<4x4xbf16>, vector<64x4xf32> -> vector<64x4xf32>
    %56 = arith.addf %47, %55 : vector<64x4xf32>
    %c1_i32 = arith.constant 1 : i32
    %57 = arith.addi %1, %c1_i32 : i32
    %c0_41 = arith.constant 0 : index
    %58 = arith.index_cast %57 : i32 to index
    %c0_42 = arith.constant 0 : index
    %c0_43 = arith.constant 0 : index
    %59 = vector.load %arg2[%c0_41, %58, %c0_42, %c0_43] : memref<1x9x9x4xbf16, #tpu.memory_space<vmem>>, vector<1x8x8x4xbf16>
    %60 = vector.shape_cast %59 : vector<1x8x8x4xbf16> to vector<8x8x4xbf16>
    %61 = vector.shape_cast %60 : vector<8x8x4xbf16> to vector<64x4xbf16>
    %c6 = arith.constant 6 : index
    %c0_44 = arith.constant 0 : index
    %c0_45 = arith.constant 0 : index
    %62 = vector.load %arg6[%c6, %c0_44, %c0_45] : memref<9x4x4xbf16, #tpu.memory_space<vmem>>, vector<1x4x4xbf16>
    %63 = vector.shape_cast %62 : vector<1x4x4xbf16> to vector<4x4xbf16>
    %cst_46 = arith.constant dense<0.000000e+00> : vector<64x4xf32>
    %64 = tpu.matmul %61, %63, %cst_46 {dimension_numbers = #tpu.dot_dimension_numbers<[1], [0], [0], [1], [0, 0, 1, 1], [], []>} : vector<64x4xbf16>, vector<4x4xbf16>, vector<64x4xf32> -> vector<64x4xf32>
    %65 = arith.addf %56, %64 : vector<64x4xf32>
    %c1_i32_47 = arith.constant 1 : i32
    %66 = arith.addi %1, %c1_i32_47 : i32
    %c0_48 = arith.constant 0 : index
    %67 = arith.index_cast %66 : i32 to index
    %c0_49 = arith.constant 0 : index
    %c0_50 = arith.constant 0 : index
    %68 = vector.load %arg3[%c0_48, %67, %c0_49, %c0_50] : memref<1x9x9x4xbf16, #tpu.memory_space<vmem>>, vector<1x8x8x4xbf16>
    %69 = vector.shape_cast %68 : vector<1x8x8x4xbf16> to vector<8x8x4xbf16>
    %70 = vector.shape_cast %69 : vector<8x8x4xbf16> to vector<64x4xbf16>
    %c7 = arith.constant 7 : index
    %c0_51 = arith.constant 0 : index
    %c0_52 = arith.constant 0 : index
    %71 = vector.load %arg6[%c7, %c0_51, %c0_52] : memref<9x4x4xbf16, #tpu.memory_space<vmem>>, vector<1x4x4xbf16>
    %72 = vector.shape_cast %71 : vector<1x4x4xbf16> to vector<4x4xbf16>
    %cst_53 = arith.constant dense<0.000000e+00> : vector<64x4xf32>
    %73 = tpu.matmul %70, %72, %cst_53 {dimension_numbers = #tpu.dot_dimension_numbers<[1], [0], [0], [1], [0, 0, 1, 1], [], []>} : vector<64x4xbf16>, vector<4x4xbf16>, vector<64x4xf32> -> vector<64x4xf32>
    %74 = arith.addf %65, %73 : vector<64x4xf32>
    %c1_i32_54 = arith.constant 1 : i32
    %75 = arith.addi %1, %c1_i32_54 : i32
    %c0_55 = arith.constant 0 : index
    %76 = arith.index_cast %75 : i32 to index
    %c1_56 = arith.constant 1 : index
    %c0_57 = arith.constant 0 : index
    %77 = vector.load %arg2[%c0_55, %76, %c1_56, %c0_57] : memref<1x9x9x4xbf16, #tpu.memory_space<vmem>>, vector<1x8x8x4xbf16>
    %78 = vector.shape_cast %77 : vector<1x8x8x4xbf16> to vector<8x8x4xbf16>
    %79 = vector.shape_cast %78 : vector<8x8x4xbf16> to vector<64x4xbf16>
    %c8 = arith.constant 8 : index
    %c0_58 = arith.constant 0 : index
    %c0_59 = arith.constant 0 : index
    %80 = vector.load %arg6[%c8, %c0_58, %c0_59] : memref<9x4x4xbf16, #tpu.memory_space<vmem>>, vector<1x4x4xbf16>
    %81 = vector.shape_cast %80 : vector<1x4x4xbf16> to vector<4x4xbf16>
    %cst_60 = arith.constant dense<0.000000e+00> : vector<64x4xf32>
    %82 = tpu.matmul %79, %81, %cst_60 {dimension_numbers = #tpu.dot_dimension_numbers<[1], [0], [0], [1], [0, 0, 1, 1], [], []>} : vector<64x4xbf16>, vector<4x4xbf16>, vector<64x4xf32> -> vector<64x4xf32>
    %83 = arith.addf %74, %82 : vector<64x4xf32>
    %c0_61 = arith.constant 0 : index
    %c0_62 = arith.constant 0 : index
    %84 = vector.load %arg7[%c0_61, %c0_62] : memref<1x4xf32, #tpu.memory_space<vmem>>, vector<1x4xf32>
    %85 = vector.broadcast %84 : vector<1x4xf32> to vector<64x4xf32>
    %86 = arith.addf %83, %85 : vector<64x4xf32>
    %cst_63 = arith.constant 0.000000e+00 : f32
    %87 = vector.broadcast %cst_63 : f32 to vector<64x4xf32>
    %88 = arith.maximumf %86, %87 : vector<64x4xf32>
    %89 = vector.shape_cast %88 : vector<64x4xf32> to vector<8x8x4xf32>
    %90 = arith.truncf %89 : vector<8x8x4xf32> to vector<8x8x4xbf16>
    %c0_64 = arith.constant 0 : index
    %c0_65 = arith.constant 0 : index
    %c0_66 = arith.constant 0 : index
    %c0_67 = arith.constant 0 : index
    %91 = vector.load %arg8[%c0_64, %c0_65, %c0_66, %c0_67] : memref<1x8x8x4xbf16, #tpu.memory_space<vmem>>, vector<1x8x8x4xbf16>
    %92 = vector.shape_cast %91 : vector<1x8x8x4xbf16> to vector<8x8x4xbf16>
    %93 = vector.shape_cast %90 : vector<8x8x4xbf16> to vector<1x8x8x4xbf16>
    tpu.vector_store %arg8[%c0_64, %c0_65, %c0_66, %c0_67], %93 {strides = array<i32>} : memref<1x8x8x4xbf16, #tpu.memory_space<vmem>>, vector<1x8x8x4xbf16>,
    return
  }
  func.func @transform_0(%arg0: i32, %arg1: i32) -> (i32, i32, i32, i32) {
    %c0_i32 = arith.constant 0 : i32
    %c0_i32_0 = arith.constant 0 : i32
    %c0_i32_1 = arith.constant 0 : i32
    %c0_i32_2 = arith.constant 0 : i32
    return %arg0, %c0_i32, %c0_i32_0, %c0_i32_1 : i32, i32, i32, i32
  }
  func.func @transform_1(%arg0: i32, %arg1: i32) -> (i32, i32, i32, i32) {
    %c0_i32 = arith.constant 0 : i32
    %c0_i32_0 = arith.constant 0 : i32
    %c0_i32_1 = arith.constant 0 : i32
    %c0_i32_2 = arith.constant 0 : i32
    return %arg0, %c0_i32, %c0_i32_0, %c0_i32_1 : i32, i32, i32, i32
  }
  func.func @transform_2(%arg0: i32, %arg1: i32) -> (i32, i32, i32, i32) {
    %c0_i32 = arith.constant 0 : i32
    %c0_i32_0 = arith.constant 0 : i32
    %c0_i32_1 = arith.constant 0 : i32
    %c0_i32_2 = arith.constant 0 : i32
    return %arg0, %c0_i32, %c0_i32_0, %c0_i32_1 : i32, i32, i32, i32
  }
  func.func @transform_3(%arg0: i32, %arg1: i32) -> (i32, i32, i32, i32) {
    %c0_i32 = arith.constant 0 : i32
    %c0_i32_0 = arith.constant 0 : i32
    %c0_i32_1 = arith.constant 0 : i32
    %c0_i32_2 = arith.constant 0 : i32
    return %arg0, %c0_i32, %c0_i32_0, %c0_i32_1 : i32, i32, i32, i32
  }
  func.func @transform_4(%arg0: i32, %arg1: i32) -> (i32, i32, i32) {
    %c0_i32 = arith.constant 0 : i32
    %c0_i32_0 = arith.constant 0 : i32
    %c0_i32_1 = arith.constant 0 : i32
    %c0_i32_2 = arith.constant 0 : i32
    return %c0_i32, %c0_i32_0, %c0_i32_1 : i32, i32, i32
  }
  func.func @transform_5(%arg0: i32, %arg1: i32) -> (i32, i32) {
    %c0_i32 = arith.constant 0 : i32
    %c0_i32_0 = arith.constant 0 : i32
    %c0_i32_1 = arith.constant 0 : i32
    return %c0_i32, %c0_i32_0 : i32, i32
  }
  func.func @transform_6(%arg0: i32, %arg1: i32) -> (i32, i32, i32, i32) {
    %c0_i32 = arith.constant 0 : i32
    %c0_i32_0 = arith.constant 0 : i32
    %c0_i32_1 = arith.constant 0 : i32
    return %arg0, %arg1, %c0_i32, %c0_i32_0 : i32, i32, i32, i32
  }
}

module attributes {stable_mosaic.version = 11 : i64} {
  func.func @_matmul_bias_add_relu_kernel(%arg0: i32, %arg1: memref<128x4xbf16, #tpu.memory_space<vmem>>, %arg2: memref<4x16xbf16, #tpu.memory_space<vmem>>, %arg3: memref<1x16xf32, #tpu.memory_space<vmem>>, %arg4: memref<128x16xbf16, #tpu.memory_space<vmem>>, %arg5: memref<128x16xbf16, #tpu.memory_space<vmem>>) attributes {dimension_semantics = [#tpu.dimension_semantics<parallel>], iteration_bounds = array<i64: 1>, scalar_prefetch = 0 : i64, scratch_operands = 0 : i64, tpu.core_type = #tpu.core_type<tc>, window_params = [{transform_indices = @transform_0, window_bounds = array<i64: 128, 4>}, {pipeline_mode = #tpu.pipeline_mode<synchronous>, transform_indices = @transform_1, window_bounds = array<i64: 4, 16>}, {pipeline_mode = #tpu.pipeline_mode<synchronous>, transform_indices = @transform_2, window_bounds = array<i64: 1, 16>}, {transform_indices = @transform_3, window_bounds = array<i64: 128, 16>}, {transform_indices = @transform_4, window_bounds = array<i64: 128, 16>}]} {
    %c0 = arith.constant 0 : index
    %c0_0 = arith.constant 0 : index
    %0 = vector.load %arg1[%c0, %c0_0] : memref<128x4xbf16, #tpu.memory_space<vmem>>, vector<128x4xbf16>
    %c0_1 = arith.constant 0 : index
    %c0_2 = arith.constant 0 : index
    %1 = vector.load %arg2[%c0_1, %c0_2] : memref<4x16xbf16, #tpu.memory_space<vmem>>, vector<4x16xbf16>
    %cst = arith.constant dense<0.000000e+00> : vector<128x16xf32>
    %2 = tpu.matmul %0, %1, %cst {dimension_numbers = #tpu.dot_dimension_numbers<[1], [0], [0], [1], [0, 0, 1, 1], [], []>} : vector<128x4xbf16>, vector<4x16xbf16>, vector<128x16xf32> -> vector<128x16xf32>
    %c0_3 = arith.constant 0 : index
    %c0_4 = arith.constant 0 : index
    %3 = vector.load %arg3[%c0_3, %c0_4] : memref<1x16xf32, #tpu.memory_space<vmem>>, vector<1x16xf32>
    %4 = vector.broadcast %3 : vector<1x16xf32> to vector<128x16xf32>
    %5 = arith.addf %2, %4 : vector<128x16xf32>
    %c0_5 = arith.constant 0 : index
    %c0_6 = arith.constant 0 : index
    %6 = vector.load %arg4[%c0_5, %c0_6] : memref<128x16xbf16, #tpu.memory_space<vmem>>, vector<128x16xbf16>
    %7 = arith.extf %6 : vector<128x16xbf16> to vector<128x16xf32>
    %8 = arith.addf %5, %7 : vector<128x16xf32>
    %cst_7 = arith.constant 0.000000e+00 : f32
    %9 = vector.broadcast %cst_7 : f32 to vector<128x16xf32>
    %10 = arith.maximumf %8, %9 : vector<128x16xf32>
    %11 = arith.truncf %10 : vector<128x16xf32> to vector<128x16xbf16>
    %c0_8 = arith.constant 0 : index
    %c0_9 = arith.constant 0 : index
    %12 = vector.load %arg5[%c0_8, %c0_9] : memref<128x16xbf16, #tpu.memory_space<vmem>>, vector<128x16xbf16>
    tpu.vector_store %arg5[%c0_8, %c0_9], %11 {strides = array<i32>} : memref<128x16xbf16, #tpu.memory_space<vmem>>, vector<128x16xbf16>,
    return
  }
  func.func @transform_0(%arg0: i32) -> (i32, i32) {
    %c0_i32 = arith.constant 0 : i32
    %c0_i32_0 = arith.constant 0 : i32
    return %arg0, %c0_i32 : i32, i32
  }
  func.func @transform_1(%arg0: i32) -> (i32, i32) {
    %c0_i32 = arith.constant 0 : i32
    %c0_i32_0 = arith.constant 0 : i32
    %c0_i32_1 = arith.constant 0 : i32
    return %c0_i32, %c0_i32_0 : i32, i32
  }
  func.func @transform_2(%arg0: i32) -> (i32, i32) {
    %c0_i32 = arith.constant 0 : i32
    %c0_i32_0 = arith.constant 0 : i32
    %c0_i32_1 = arith.constant 0 : i32
    return %c0_i32, %c0_i32_0 : i32, i32
  }
  func.func @transform_3(%arg0: i32) -> (i32, i32) {
    %c0_i32 = arith.constant 0 : i32
    %c0_i32_0 = arith.constant 0 : i32
    return %arg0, %c0_i32 : i32, i32
  }
  func.func @transform_4(%arg0: i32) -> (i32, i32) {
    %c0_i32 = arith.constant 0 : i32
    %c0_i32_0 = arith.constant 0 : i32
    return %arg0, %c0_i32 : i32, i32
  }
}

</mosaic_0001>

<bundles_post_ra>
// kernel: bottleneck_forward.4
= control target key start
LH: loop header
LB: loop body
LE: loop exit
PB: predicated region body
PF: predicated region fallthrough
CT: control target
= control target key end

     0   :  { %vm344_vm0 = vcmask 1041408   ;;  %vm247_vm1 = vcmask 31744   ;;  %vm957_vm2 = vcmask 27648   ;;  %s1830_s1 = inlined_call_operand.vmem [shape: bf16[4,4], index: 1, kind: input, shape index: {}]   ;;  %s1831_s0 = inlined_call_operand.vmem [shape: bf16[512,4], index: 0, kind: input, shape index: {}]   ;;  %s1832_s2 = inlined_call_operand.vmem [shape: f32[1,4], index: 2, kind: input, shape index: {}]   ;;  %s1833_s3 = inlined_call_operand.vmem [shape: bf16[512,4], index: 3, kind: output, shape index: {}]  }
   0x1   :  { %v79_v0 = vld [vmem:[%s1830_s1] sm:$0x3]  ;;  %v1324_v4 = vld [vmem:[%s1831_s0 + $0x8] sm:$0xff]   ;;  %v1326_v6 = vld [vmem:[%s1831_s0 + $0x10] sm:$0xff]  }
   0x2   :  { %1320 = vmatprep.subr.msk.bf16.mxu0 %vm344_vm0, %v79_v0  ;;  %1321 = vmatprep.subr.msk.bf16.mxu1 %vm344_vm0, %v79_v0  ;;  %v346_v1 = vsel %vm344_vm0, %v79_v0, 0  ;;  %v1322_v2 = vld [vmem:[%s1831_s0] sm:$0xff]   ;;  %v1325_v5 = vld [vmem:[%s1831_s0 + $0x88] sm:$0xff]   ;;  %v1327_v7 = vld [vmem:[%s1831_s0 + $0x90] sm:$0xff]  }
   0x3   :  { %1253 = vmatpush3.bf16.msra.mxu0 %v346_v1  ;;  %1319 = vmatpush3.bf16.msra.mxu1 %v346_v1  ;;  %v1323_v3 = vld [vmem:[%s1831_s0 + $0x80] sm:$0xff]   ;;  %v1328_v8 = vld [vmem:[%s1831_s0 + $0x18] sm:$0xff]   ;;  %v1332_v12 = vld [vmem:[%s1831_s0 + $0x28] sm:$0xff]  }
   0x4   :  { %1254 = vmatprep.mubr.msk.bf16.mxu0 %vm247_vm1, %v1322_v2  ;;  %1286 = vmatprep.mubr.msk.bf16.mxu1 %vm247_vm1, %v1323_v3  ;;  %v1329_v9 = vld [vmem:[%s1831_s0 + $0x98] sm:$0xff]   ;;  %v1330_v10 = vld [vmem:[%s1831_s0 + $0x20] sm:$0xff]   ;;  %v1333_v13 = vld [vmem:[%s1831_s0 + $0xa8] sm:$0xff]  }
   0x5   :  { %v1331_v11 = vld [vmem:[%s1831_s0 + $0xa0] sm:$0xff]   ;;  %v1334_v14 = vld [vmem:[%s1831_s0 + $0x30] sm:$0xff]   ;;  %v1336_v16 = vld [vmem:[%s1831_s0 + $0x38] sm:$0xff]  }
   0x6   :  { %1255 = vmatmul.mubr.msk.bf16.vlgmr.msra.gmra.mxu0 %vm247_vm1, %v1324_v4  ;;  %1287 = vmatmul.mubr.msk.bf16.vlgmr.msra.gmra.mxu1 %vm247_vm1, %v1325_v5  ;;  %v1335_v15 = vld [vmem:[%s1831_s0 + $0xb0] sm:$0xff]   ;;  %v1337_v17 = vld [vmem:[%s1831_s0 + $0xb8] sm:$0xff]   ;;  %v1338_v18 = vld [vmem:[%s1831_s0 + $0x40] sm:$0xff]  }
   0x7   :  { %1258 = vmatprep.mubr.msk.bf16.mxu0 %vm247_vm1, %v1326_v6  ;;  %1290 = vmatprep.mubr.msk.bf16.mxu1 %vm247_vm1, %v1327_v7  ;;  %v1339_v19 = vld [vmem:[%s1831_s0 + $0xc0] sm:$0xff]   ;;  %v1340_v20 = vld [vmem:[%s1831_s0 + $0x48] sm:$0xff]   ;;  %v1342_v22 = vld [vmem:[%s1831_s0 + $0x50] sm:$0xff]  }
   0x8   :  { %v1341_v21 = vld [vmem:[%s1831_s0 + $0xc8] sm:$0xff]   ;;  %v1343_v23 = vld [vmem:[%s1831_s0 + $0xd0] sm:$0xff]   ;;  %v1344_v24 = vld [vmem:[%s1831_s0 + $0x58] sm:$0xff]  }
   0x9   :  { %v1345_v25 = vld [vmem:[%s1831_s0 + $0xd8] sm:$0xff]   ;;  %v1346_v26 = vld [vmem:[%s1831_s0 + $0x60] sm:$0xff]   ;;  %v1348_v28 = vld [vmem:[%s1831_s0 + $0x68] sm:$0xff]  }
   0xa   :  { %v1347_v27 = vld [vmem:[%s1831_s0 + $0xe0] sm:$0xff]   ;;  %v1349_v29 = vld [vmem:[%s1831_s0 + $0xe8] sm:$0xff]   ;;  %v1350_v30 = vld [vmem:[%s1831_s0 + $0x70] sm:$0xff]  }
   0xb   :  { %v1351_v31 = vld [vmem:[%s1831_s0 + $0xf0] sm:$0xff]   ;;  %v1352_v32 = vld [vmem:[%s1831_s0 + $0x78] sm:$0xff]   ;;  %v1508_v34 = vld [vmem:[%s1832_s2] ss:$0 sm:$0xff] }
   0xc   :  { %v1353_v33 = vld [vmem:[%s1831_s0 + $0xf8] sm:$0xff]  }
   0xe   :  { %1259 = vmatmul.mubr.msk.bf16.gmra.mxu0 %vm247_vm1, %v1328_v8  ;;  %1291 = vmatmul.mubr.msk.bf16.gmra.mxu1 %vm247_vm1, %v1329_v9 }
   0xf   :  { %1262 = vmatprep.mubr.msk.bf16.mxu0 %vm247_vm1, %v1330_v10  ;;  %1294 = vmatprep.mubr.msk.bf16.mxu1 %vm247_vm1, %v1331_v11 }
  0x16   :  { %1263 = vmatmul.mubr.msk.bf16.gmra.mxu0 %vm247_vm1, %v1332_v12  ;;  %1295 = vmatmul.mubr.msk.bf16.gmra.mxu1 %vm247_vm1, %v1333_v13 }
  0x17   :  { %1266 = vmatprep.mubr.msk.bf16.mxu0 %vm247_vm1, %v1334_v14  ;;  %1298 = vmatprep.mubr.msk.bf16.mxu1 %vm247_vm1, %v1335_v15 }
  0x1e   :  { %1267 = vmatmul.mubr.msk.bf16.gmra.mxu0 %vm247_vm1, %v1336_v16  ;;  %1299 = vmatmul.mubr.msk.bf16.gmra.mxu1 %vm247_vm1, %v1337_v17 }
  0x1f   :  { %1270 = vmatprep.mubr.msk.bf16.mxu0 %vm247_vm1, %v1338_v18  ;;  %1302 = vmatprep.mubr.msk.bf16.mxu1 %vm247_vm1, %v1339_v19 }
  0x26   :  { %1271 = vmatmul.mubr.msk.bf16.gmra.mxu0 %vm247_vm1, %v1340_v20  ;;  %1303 = vmatmul.mubr.msk.bf16.gmra.mxu1 %vm247_vm1, %v1341_v21 }
  0x27   :  { %1274 = vmatprep.mubr.msk.bf16.mxu0 %vm247_vm1, %v1342_v22  ;;  %1306 = vmatprep.mubr.msk.bf16.mxu1 %vm247_vm1, %v1343_v23 }
  0x2e   :  { %1275 = vmatmul.mubr.msk.bf16.gmra.mxu0 %vm247_vm1, %v1344_v24  ;;  %1307 = vmatmul.mubr.msk.bf16.gmra.mxu1 %vm247_vm1, %v1345_v25 }
  0x2f   :  { %1278 = vmatprep.mubr.msk.bf16.mxu0 %vm247_vm1, %v1346_v26  ;;  %1310 = vmatprep.mubr.msk.bf16.mxu1 %vm247_vm1, %v1347_v27 }
  0x36   :  { %1279 = vmatmul.mubr.msk.bf16.gmra.mxu0 %vm247_vm1, %v1348_v28  ;;  %1311 = vmatmul.mubr.msk.bf16.gmra.mxu1 %vm247_vm1, %v1349_v29 }
  0x37   :  { %1282 = vmatprep.mubr.msk.bf16.mxu0 %vm247_vm1, %v1350_v30  ;;  %1314 = vmatprep.mubr.msk.bf16.mxu1 %vm247_vm1, %v1351_v31 }
  0x3e   :  { %1283 = vmatmul.mubr.msk.bf16.gmra.mxu0 %vm247_vm1, %v1352_v32  ;;  %1315 = vmatmul.mubr.msk.bf16.gmra.mxu1 %vm247_vm1, %v1353_v33 }
  0xc6   :  { %v1256_v35 = vpop.f32.mrf.mxu0  ;;  %v1288_v37 = vpop.f32.mrf.mxu1 }
  0xc7   :  { %v391_v36 = vadd.f32 %v1256_v35, %v1508_v34  ;;  %v519_v38 = vadd.f32 %v1288_v37, %v1508_v34 }
  0xc8   :  { %v382_v39 = vpop.f32.mrf.mxu0  ;;  %v510_v42 = vpop.f32.mrf.mxu1 }
  0xc9   :  { %v639_v40 = vmax.f32 %v391_v36, 0.0  ;;  %v383_v41 = vadd.f32 %v1508_v34, %v382_v39  ;;  %v671_v43 = vmax.f32 %v519_v38, 0.0  ;;  %v511_v44 = vadd.f32 %v1508_v34, %v510_v42 }
  0xca   :  { %v1257_v45 = vpop.f32.mrf.mxu0  ;;  %v1289_v49 = vpop.f32.mrf.mxu1 }
  0xcb   :  { %v1157_v46 = vpack.c.bf16 %v639_v40, %v639_v40  ;;  %v637_v47 = vmax.f32 %v383_v41, 0.0  ;;  %v394_v48 = vadd.f32 %v1257_v45, %v1508_v34  ;;  %v1189_v50 = vpack.c.bf16 %v671_v43, %v671_v43 }
  0xcc   :  { %v669_v51 = vmax.f32 %v511_v44, 0.0  ;;  %v522_v52 = vadd.f32 %v1289_v49, %v1508_v34  ;;  %v385_v53 = vpop.f32.mrf.mxu0  ;;  %v513_v57 = vpop.f32.mrf.mxu1 }
  0xcd   :  { %960 = vst.msk [vmem:[%s1833_s3 + $0x8] sm:$0xf] %vm957_vm2, %v1157_v46  ;;  %v1155_v54 = vpack.c.bf16 %v637_v47, %v637_v47  ;;  %v640_v55 = vmax.f32 %v394_v48, 0.0  ;;  %v386_v56 = vadd.f32 %v1508_v34, %v385_v53  ;;  %992 = vst.msk [vmem:[%s1833_s3 + $0x88] sm:$0xf] %vm957_vm2, %v1189_v50  ;;  %v514_v60 = vadd.f32 %v1508_v34, %v513_v57 }
  0xce   :  { %v1187_v58 = vpack.c.bf16 %v669_v51, %v669_v51  ;;  %v672_v59 = vmax.f32 %v522_v52, 0.0  ;;  %v1260_v61 = vpop.f32.mrf.mxu0  ;;  %v1292_v1 = vpop.f32.mrf.mxu1 }
  0xcf   :  { %958 = vst.msk [vmem:[%s1833_s3] sm:$0xf] %vm957_vm2, %v1155_v54  ;;  %v1158_v62 = vpack.c.bf16 %v640_v55, %v640_v55  ;;  %v638_v63 = vmax.f32 %v386_v56, 0.0  ;;  %v407_v0 = vadd.f32 %v1260_v61, %v1508_v34  ;;  %v670_v3 = vmax.f32 %v514_v60, 0.0 }
  0xd0   :  { %990 = vst.msk [vmem:[%s1833_s3 + $0x80] sm:$0xf] %vm957_vm2, %v1187_v58  ;;  %v1190_v2 = vpack.c.bf16 %v672_v59, %v672_v59  ;;  %v535_v4 = vadd.f32 %v1292_v1, %v1508_v34  ;;  %v398_v5 = vpop.f32.mrf.mxu0  ;;  %v526_v9 = vpop.f32.mrf.mxu1 }
  0xd1   :  { %961 = vst.msk [vmem:[%s1833_s3 + $0xc] sm:$0xf] %vm957_vm2, %v1158_v62  ;;  %v1156_v6 = vpack.c.bf16 %v638_v63, %v638_v63  ;;  %v643_v7 = vmax.f32 %v407_v0, 0.0  ;;  %v399_v8 = vadd.f32 %v1508_v34, %v398_v5  ;;  %v1188_v10 = vpack.c.bf16 %v670_v3, %v670_v3 }
  0xd2   :  { %993 = vst.msk [vmem:[%s1833_s3 + $0x8c] sm:$0xf] %vm957_vm2, %v1190_v2  ;;  %v675_v11 = vmax.f32 %v535_v4, 0.0  ;;  %v527_v12 = vadd.f32 %v1508_v34, %v526_v9  ;;  %v1261_v13 = vpop.f32.mrf.mxu0  ;;  %v1293_v17 = vpop.f32.mrf.mxu1 }
  0xd3   :  { %959 = vst.msk [vmem:[%s1833_s3 + $0x4] sm:$0xf] %vm957_vm2, %v1156_v6  ;;  %v1161_v14 = vpack.c.bf16 %v643_v7, %v643_v7  ;;  %v641_v15 = vmax.f32 %v399_v8, 0.0  ;;  %v410_v16 = vadd.f32 %v1261_v13, %v1508_v34  ;;  %991 = vst.msk [vmem:[%s1833_s3 + $0x84] sm:$0xf] %vm957_vm2, %v1188_v10  ;;  %v538_v20 = vadd.f32 %v1293_v17, %v1508_v34 }
  0xd4   :  { %v1193_v18 = vpack.c.bf16 %v675_v11, %v675_v11  ;;  %v673_v19 = vmax.f32 %v527_v12, 0.0  ;;  %v401_v21 = vpop.f32.mrf.mxu0  ;;  %v529_v25 = vpop.f32.mrf.mxu1 }
  0xd5   :  { %964 = vst.msk [vmem:[%s1833_s3 + $0x18] sm:$0xf] %vm957_vm2, %v1161_v14  ;;  %v1159_v22 = vpack.c.bf16 %v641_v15, %v641_v15  ;;  %v644_v23 = vmax.f32 %v410_v16, 0.0  ;;  %v402_v24 = vadd.f32 %v1508_v34, %v401_v21  ;;  %v676_v27 = vmax.f32 %v538_v20, 0.0 }
  0xd6   :  { %996 = vst.msk [vmem:[%s1833_s3 + $0x98] sm:$0xf] %vm957_vm2, %v1193_v18  ;;  %v1191_v26 = vpack.c.bf16 %v673_v19, %v673_v19  ;;  %v530_v28 = vadd.f32 %v1508_v34, %v529_v25  ;;  %v1264_v29 = vpop.f32.mrf.mxu0  ;;  %v1296_v33 = vpop.f32.mrf.mxu1 }
  0xd7   :  { %962 = vst.msk [vmem:[%s1833_s3 + $0x10] sm:$0xf] %vm957_vm2, %v1159_v22  ;;  %v1162_v30 = vpack.c.bf16 %v644_v23, %v644_v23  ;;  %v642_v31 = vmax.f32 %v402_v24, 0.0  ;;  %v423_v32 = vadd.f32 %v1264_v29, %v1508_v34  ;;  %v1194_v35 = vpack.c.bf16 %v676_v27, %v676_v27 }
  0xd8   :  { %994 = vst.msk [vmem:[%s1833_s3 + $0x90] sm:$0xf] %vm957_vm2, %v1191_v26  ;;  %v674_v36 = vmax.f32 %v530_v28, 0.0  ;;  %v551_v37 = vadd.f32 %v1296_v33, %v1508_v34  ;;  %v414_v38 = vpop.f32.mrf.mxu0  ;;  %v542_v42 = vpop.f32.mrf.mxu1 }
  0xd9   :  { %965 = vst.msk [vmem:[%s1833_s3 + $0x1c] sm:$0xf] %vm957_vm2, %v1162_v30  ;;  %v1160_v39 = vpack.c.bf16 %v642_v31, %v642_v31  ;;  %v647_v40 = vmax.f32 %v423_v32, 0.0  ;;  %v415_v41 = vadd.f32 %v1508_v34, %v414_v38  ;;  %997 = vst.msk [vmem:[%s1833_s3 + $0x9c] sm:$0xf] %vm957_vm2, %v1194_v35  ;;  %v543_v45 = vadd.f32 %v1508_v34, %v542_v42 }
  0xda   :  { %v1192_v43 = vpack.c.bf16 %v674_v36, %v674_v36  ;;  %v679_v44 = vmax.f32 %v551_v37, 0.0  ;;  %v1265_v46 = vpop.f32.mrf.mxu0  ;;  %v1297_v50 = vpop.f32.mrf.mxu1 }
  0xdb   :  { %963 = vst.msk [vmem:[%s1833_s3 + $0x14] sm:$0xf] %vm957_vm2, %v1160_v39  ;;  %v1165_v47 = vpack.c.bf16 %v647_v40, %v647_v40  ;;  %v645_v48 = vmax.f32 %v415_v41, 0.0  ;;  %v426_v49 = vadd.f32 %v1265_v46, %v1508_v34  ;;  %v677_v52 = vmax.f32 %v543_v45, 0.0 }
  0xdc   :  { %995 = vst.msk [vmem:[%s1833_s3 + $0x94] sm:$0xf] %vm957_vm2, %v1192_v43  ;;  %v1197_v51 = vpack.c.bf16 %v679_v44, %v679_v44  ;;  %v554_v53 = vadd.f32 %v1297_v50, %v1508_v34  ;;  %v417_v54 = vpop.f32.mrf.mxu0  ;;  %v545_v58 = vpop.f32.mrf.mxu1 }
  0xdd   :  { %968 = vst.msk [vmem:[%s1833_s3 + $0x28] sm:$0xf] %vm957_vm2, %v1165_v47  ;;  %v1163_v55 = vpack.c.bf16 %v645_v48, %v645_v48  ;;  %v648_v56 = vmax.f32 %v426_v49, 0.0  ;;  %v418_v57 = vadd.f32 %v1508_v34, %v417_v54  ;;  %v1195_v59 = vpack.c.bf16 %v677_v52, %v677_v52 }
  0xde   :  { %1000 = vst.msk [vmem:[%s1833_s3 + $0xa8] sm:$0xf] %vm957_vm2, %v1197_v51  ;;  %v680_v60 = vmax.f32 %v554_v53, 0.0  ;;  %v546_v61 = vadd.f32 %v1508_v34, %v545_v58  ;;  %v1268_v62 = vpop.f32.mrf.mxu0  ;;  %v1300_v2 = vpop.f32.mrf.mxu1 }
  0xdf   :  { %966 = vst.msk [vmem:[%s1833_s3 + $0x20] sm:$0xf] %vm957_vm2, %v1163_v55  ;;  %v1166_v63 = vpack.c.bf16 %v648_v56, %v648_v56  ;;  %v646_v0 = vmax.f32 %v418_v57, 0.0  ;;  %v439_v1 = vadd.f32 %v1268_v62, %v1508_v34  ;;  %998 = vst.msk [vmem:[%s1833_s3 + $0xa0] sm:$0xf] %vm957_vm2, %v1195_v59  ;;  %v567_v5 = vadd.f32 %v1300_v2, %v1508_v34 }
  0xe0   :  { %v1198_v3 = vpack.c.bf16 %v680_v60, %v680_v60  ;;  %v678_v4 = vmax.f32 %v546_v61, 0.0  ;;  %v430_v6 = vpop.f32.mrf.mxu0  ;;  %v558_v10 = vpop.f32.mrf.mxu1 }
  0xe1   :  { %969 = vst.msk [vmem:[%s1833_s3 + $0x2c] sm:$0xf] %vm957_vm2, %v1166_v63  ;;  %v1164_v7 = vpack.c.bf16 %v646_v0, %v646_v0  ;;  %v651_v8 = vmax.f32 %v439_v1, 0.0  ;;  %v431_v9 = vadd.f32 %v1508_v34, %v430_v6  ;;  %v683_v12 = vmax.f32 %v567_v5, 0.0 }
  0xe2   :  { %1001 = vst.msk [vmem:[%s1833_s3 + $0xac] sm:$0xf] %vm957_vm2, %v1198_v3  ;;  %v1196_v11 = vpack.c.bf16 %v678_v4, %v678_v4  ;;  %v559_v13 = vadd.f32 %v1508_v34, %v558_v10  ;;  %v1269_v14 = vpop.f32.mrf.mxu0  ;;  %v1301_v18 = vpop.f32.mrf.mxu1 }
  0xe3   :  { %967 = vst.msk [vmem:[%s1833_s3 + $0x24] sm:$0xf] %vm957_vm2, %v1164_v7  ;;  %v1169_v15 = vpack.c.bf16 %v651_v8, %v651_v8  ;;  %v649_v16 = vmax.f32 %v431_v9, 0.0  ;;  %v442_v17 = vadd.f32 %v1269_v14, %v1508_v34  ;;  %v1201_v19 = vpack.c.bf16 %v683_v12, %v683_v12 }
  0xe4   :  { %999 = vst.msk [vmem:[%s1833_s3 + $0xa4] sm:$0xf] %vm957_vm2, %v1196_v11  ;;  %v681_v20 = vmax.f32 %v559_v13, 0.0  ;;  %v570_v21 = vadd.f32 %v1301_v18, %v1508_v34  ;;  %v433_v22 = vpop.f32.mrf.mxu0  ;;  %v561_v26 = vpop.f32.mrf.mxu1 }
  0xe5   :  { %972 = vst.msk [vmem:[%s1833_s3 + $0x38] sm:$0xf] %vm957_vm2, %v1169_v15  ;;  %v1167_v23 = vpack.c.bf16 %v649_v16, %v649_v16  ;;  %v652_v24 = vmax.f32 %v442_v17, 0.0  ;;  %v434_v25 = vadd.f32 %v1508_v34, %v433_v22  ;;  %1004 = vst.msk [vmem:[%s1833_s3 + $0xb8] sm:$0xf] %vm957_vm2, %v1201_v19  ;;  %v562_v29 = vadd.f32 %v1508_v34, %v561_v26 }
  0xe6   :  { %v1199_v27 = vpack.c.bf16 %v681_v20, %v681_v20  ;;  %v684_v28 = vmax.f32 %v570_v21, 0.0  ;;  %v1272_v30 = vpop.f32.mrf.mxu0  ;;  %v1304_v35 = vpop.f32.mrf.mxu1 }
  0xe7   :  { %970 = vst.msk [vmem:[%s1833_s3 + $0x30] sm:$0xf] %vm957_vm2, %v1167_v23  ;;  %v1170_v31 = vpack.c.bf16 %v652_v24, %v652_v24  ;;  %v650_v32 = vmax.f32 %v434_v25, 0.0  ;;  %v455_v33 = vadd.f32 %v1272_v30, %v1508_v34  ;;  %v682_v37 = vmax.f32 %v562_v29, 0.0 }
  0xe8   :  { %1002 = vst.msk [vmem:[%s1833_s3 + $0xb0] sm:$0xf] %vm957_vm2, %v1199_v27  ;;  %v1202_v36 = vpack.c.bf16 %v684_v28, %v684_v28  ;;  %v583_v38 = vadd.f32 %v1304_v35, %v1508_v34  ;;  %v446_v39 = vpop.f32.mrf.mxu0  ;;  %v574_v43 = vpop.f32.mrf.mxu1 }
  0xe9   :  { %973 = vst.msk [vmem:[%s1833_s3 + $0x3c] sm:$0xf] %vm957_vm2, %v1170_v31  ;;  %v1168_v40 = vpack.c.bf16 %v650_v32, %v650_v32  ;;  %v655_v41 = vmax.f32 %v455_v33, 0.0  ;;  %v447_v42 = vadd.f32 %v1508_v34, %v446_v39  ;;  %v1200_v44 = vpack.c.bf16 %v682_v37, %v682_v37 }
  0xea   :  { %1005 = vst.msk [vmem:[%s1833_s3 + $0xbc] sm:$0xf] %vm957_vm2, %v1202_v36  ;;  %v687_v45 = vmax.f32 %v583_v38, 0.0  ;;  %v575_v46 = vadd.f32 %v1508_v34, %v574_v43  ;;  %v1273_v47 = vpop.f32.mrf.mxu0  ;;  %v1305_v51 = vpop.f32.mrf.mxu1 }
  0xeb   :  { %971 = vst.msk [vmem:[%s1833_s3 + $0x34] sm:$0xf] %vm957_vm2, %v1168_v40  ;;  %v1173_v48 = vpack.c.bf16 %v655_v41, %v655_v41  ;;  %v653_v49 = vmax.f32 %v447_v42, 0.0  ;;  %v458_v50 = vadd.f32 %v1273_v47, %v1508_v34  ;;  %1003 = vst.msk [vmem:[%s1833_s3 + $0xb4] sm:$0xf] %vm957_vm2, %v1200_v44  ;;  %v586_v54 = vadd.f32 %v1305_v51, %v1508_v34 }
  0xec   :  { %v1205_v52 = vpack.c.bf16 %v687_v45, %v687_v45  ;;  %v685_v53 = vmax.f32 %v575_v46, 0.0  ;;  %v449_v55 = vpop.f32.mrf.mxu0  ;;  %v577_v59 = vpop.f32.mrf.mxu1 }
  0xed   :  { %976 = vst.msk [vmem:[%s1833_s3 + $0x48] sm:$0xf] %vm957_vm2, %v1173_v48  ;;  %v1171_v56 = vpack.c.bf16 %v653_v49, %v653_v49  ;;  %v656_v57 = vmax.f32 %v458_v50, 0.0  ;;  %v450_v58 = vadd.f32 %v1508_v34, %v449_v55  ;;  %v688_v61 = vmax.f32 %v586_v54, 0.0 }
  0xee   :  { %1008 = vst.msk [vmem:[%s1833_s3 + $0xc8] sm:$0xf] %vm957_vm2, %v1205_v52  ;;  %v1203_v60 = vpack.c.bf16 %v685_v53, %v685_v53  ;;  %v578_v62 = vadd.f32 %v1508_v34, %v577_v59  ;;  %v1276_v63 = vpop.f32.mrf.mxu0  ;;  %v1308_v3 = vpop.f32.mrf.mxu1 }
  0xef   :  { %974 = vst.msk [vmem:[%s1833_s3 + $0x40] sm:$0xf] %vm957_vm2, %v1171_v56  ;;  %v1174_v0 = vpack.c.bf16 %v656_v57, %v656_v57  ;;  %v654_v1 = vmax.f32 %v450_v58, 0.0  ;;  %v471_v2 = vadd.f32 %v1276_v63, %v1508_v34  ;;  %v1206_v4 = vpack.c.bf16 %v688_v61, %v688_v61 }
  0xf0   :  { %1006 = vst.msk [vmem:[%s1833_s3 + $0xc0] sm:$0xf] %vm957_vm2, %v1203_v60  ;;  %v686_v5 = vmax.f32 %v578_v62, 0.0  ;;  %v599_v6 = vadd.f32 %v1308_v3, %v1508_v34  ;;  %v462_v7 = vpop.f32.mrf.mxu0  ;;  %v590_v11 = vpop.f32.mrf.mxu1 }
  0xf1   :  { %977 = vst.msk [vmem:[%s1833_s3 + $0x4c] sm:$0xf] %vm957_vm2, %v1174_v0  ;;  %v1172_v8 = vpack.c.bf16 %v654_v1, %v654_v1  ;;  %v659_v9 = vmax.f32 %v471_v2, 0.0  ;;  %v463_v10 = vadd.f32 %v1508_v34, %v462_v7  ;;  %1009 = vst.msk [vmem:[%s1833_s3 + $0xcc] sm:$0xf] %vm957_vm2, %v1206_v4  ;;  %v591_v14 = vadd.f32 %v1508_v34, %v590_v11 }
  0xf2   :  { %v1204_v12 = vpack.c.bf16 %v686_v5, %v686_v5  ;;  %v691_v13 = vmax.f32 %v599_v6, 0.0  ;;  %v1277_v15 = vpop.f32.mrf.mxu0  ;;  %v1309_v19 = vpop.f32.mrf.mxu1 }
  0xf3   :  { %975 = vst.msk [vmem:[%s1833_s3 + $0x44] sm:$0xf] %vm957_vm2, %v1172_v8  ;;  %v1177_v16 = vpack.c.bf16 %v659_v9, %v659_v9  ;;  %v657_v17 = vmax.f32 %v463_v10, 0.0  ;;  %v474_v18 = vadd.f32 %v1277_v15, %v1508_v34  ;;  %v689_v21 = vmax.f32 %v591_v14, 0.0 }
  0xf4   :  { %1007 = vst.msk [vmem:[%s1833_s3 + $0xc4] sm:$0xf] %vm957_vm2, %v1204_v12  ;;  %v1209_v20 = vpack.c.bf16 %v691_v13, %v691_v13  ;;  %v602_v22 = vadd.f32 %v1309_v19, %v1508_v34  ;;  %v465_v23 = vpop.f32.mrf.mxu0  ;;  %v593_v27 = vpop.f32.mrf.mxu1 }
  0xf5   :  { %980 = vst.msk [vmem:[%s1833_s3 + $0x58] sm:$0xf] %vm957_vm2, %v1177_v16  ;;  %v1175_v24 = vpack.c.bf16 %v657_v17, %v657_v17  ;;  %v660_v25 = vmax.f32 %v474_v18, 0.0  ;;  %v466_v26 = vadd.f32 %v1508_v34, %v465_v23  ;;  %v1207_v28 = vpack.c.bf16 %v689_v21, %v689_v21 }
  0xf6   :  { %1012 = vst.msk [vmem:[%s1833_s3 + $0xd8] sm:$0xf] %vm957_vm2, %v1209_v20  ;;  %v692_v29 = vmax.f32 %v602_v22, 0.0  ;;  %v594_v30 = vadd.f32 %v1508_v34, %v593_v27  ;;  %v1280_v31 = vpop.f32.mrf.mxu0  ;;  %v1312_v36 = vpop.f32.mrf.mxu1 }
  0xf7   :  { %978 = vst.msk [vmem:[%s1833_s3 + $0x50] sm:$0xf] %vm957_vm2, %v1175_v24  ;;  %v1178_v32 = vpack.c.bf16 %v660_v25, %v660_v25  ;;  %v658_v33 = vmax.f32 %v466_v26, 0.0  ;;  %v487_v35 = vadd.f32 %v1280_v31, %v1508_v34  ;;  %1010 = vst.msk [vmem:[%s1833_s3 + $0xd0] sm:$0xf] %vm957_vm2, %v1207_v28  ;;  %v615_v39 = vadd.f32 %v1312_v36, %v1508_v34 }
  0xf8   :  { %v1210_v37 = vpack.c.bf16 %v692_v29, %v692_v29  ;;  %v690_v38 = vmax.f32 %v594_v30, 0.0  ;;  %v478_v40 = vpop.f32.mrf.mxu0  ;;  %v606_v44 = vpop.f32.mrf.mxu1 }
  0xf9   :  { %981 = vst.msk [vmem:[%s1833_s3 + $0x5c] sm:$0xf] %vm957_vm2, %v1178_v32  ;;  %v1176_v41 = vpack.c.bf16 %v658_v33, %v658_v33  ;;  %v663_v42 = vmax.f32 %v487_v35, 0.0  ;;  %v479_v43 = vadd.f32 %v1508_v34, %v478_v40  ;;  %v695_v46 = vmax.f32 %v615_v39, 0.0 }
  0xfa   :  { %1013 = vst.msk [vmem:[%s1833_s3 + $0xdc] sm:$0xf] %vm957_vm2, %v1210_v37  ;;  %v1208_v45 = vpack.c.bf16 %v690_v38, %v690_v38  ;;  %v607_v47 = vadd.f32 %v1508_v34, %v606_v44  ;;  %v1281_v48 = vpop.f32.mrf.mxu0  ;;  %v1313_v52 = vpop.f32.mrf.mxu1 }
  0xfb   :  { %979 = vst.msk [vmem:[%s1833_s3 + $0x54] sm:$0xf] %vm957_vm2, %v1176_v41  ;;  %v1181_v49 = vpack.c.bf16 %v663_v42, %v663_v42  ;;  %v661_v50 = vmax.f32 %v479_v43, 0.0  ;;  %v490_v51 = vadd.f32 %v1281_v48, %v1508_v34  ;;  %v1213_v53 = vpack.c.bf16 %v695_v46, %v695_v46 }
  0xfc   :  { %1011 = vst.msk [vmem:[%s1833_s3 + $0xd4] sm:$0xf] %vm957_vm2, %v1208_v45  ;;  %v693_v54 = vmax.f32 %v607_v47, 0.0  ;;  %v618_v55 = vadd.f32 %v1313_v52, %v1508_v34  ;;  %v481_v56 = vpop.f32.mrf.mxu0  ;;  %v609_v60 = vpop.f32.mrf.mxu1 }
  0xfd   :  { %984 = vst.msk [vmem:[%s1833_s3 + $0x68] sm:$0xf] %vm957_vm2, %v1181_v49  ;;  %v1179_v57 = vpack.c.bf16 %v661_v50, %v661_v50  ;;  %v664_v58 = vmax.f32 %v490_v51, 0.0  ;;  %v482_v59 = vadd.f32 %v1508_v34, %v481_v56  ;;  %1016 = vst.msk [vmem:[%s1833_s3 + $0xe8] sm:$0xf] %vm957_vm2, %v1213_v53  ;;  %v610_v63 = vadd.f32 %v1508_v34, %v609_v60 }
  0xfe   :  { %v1211_v61 = vpack.c.bf16 %v693_v54, %v693_v54  ;;  %v696_v62 = vmax.f32 %v618_v55, 0.0  ;;  %v1284_v0 = vpop.f32.mrf.mxu0  ;;  %v1316_v4 = vpop.f32.mrf.mxu1 }
  0xff   :  { %982 = vst.msk [vmem:[%s1833_s3 + $0x60] sm:$0xf] %vm957_vm2, %v1179_v57  ;;  %v1182_v1 = vpack.c.bf16 %v664_v58, %v664_v58  ;;  %v662_v2 = vmax.f32 %v482_v59, 0.0  ;;  %v503_v3 = vadd.f32 %v1284_v0, %v1508_v34  ;;  %v694_v6 = vmax.f32 %v610_v63, 0.0 }
 0x100   :  { %1014 = vst.msk [vmem:[%s1833_s3 + $0xe0] sm:$0xf] %vm957_vm2, %v1211_v61  ;;  %v1214_v5 = vpack.c.bf16 %v696_v62, %v696_v62  ;;  %v631_v7 = vadd.f32 %v1316_v4, %v1508_v34  ;;  %v494_v8 = vpop.f32.mrf.mxu0  ;;  %v622_v12 = vpop.f32.mrf.mxu1 }
 0x101   :  { %985 = vst.msk [vmem:[%s1833_s3 + $0x6c] sm:$0xf] %vm957_vm2, %v1182_v1  ;;  %v1180_v9 = vpack.c.bf16 %v662_v2, %v662_v2  ;;  %v667_v10 = vmax.f32 %v503_v3, 0.0  ;;  %v495_v11 = vadd.f32 %v1508_v34, %v494_v8  ;;  %v1212_v13 = vpack.c.bf16 %v694_v6, %v694_v6 }
 0x102   :  { %1017 = vst.msk [vmem:[%s1833_s3 + $0xec] sm:$0xf] %vm957_vm2, %v1214_v5  ;;  %v699_v14 = vmax.f32 %v631_v7, 0.0  ;;  %v623_v15 = vadd.f32 %v1508_v34, %v622_v12  ;;  %v1285_v16 = vpop.f32.mrf.mxu0  ;;  %v1317_v20 = vpop.f32.mrf.mxu1 }
 0x103   :  { %983 = vst.msk [vmem:[%s1833_s3 + $0x64] sm:$0xf] %vm957_vm2, %v1180_v9  ;;  %v1185_v17 = vpack.c.bf16 %v667_v10, %v667_v10  ;;  %v665_v18 = vmax.f32 %v495_v11, 0.0  ;;  %v506_v19 = vadd.f32 %v1285_v16, %v1508_v34  ;;  %1015 = vst.msk [vmem:[%s1833_s3 + $0xe4] sm:$0xf] %vm957_vm2, %v1212_v13  ;;  %v634_v23 = vadd.f32 %v1317_v20, %v1508_v34 }
 0x104   :  { %v1217_v21 = vpack.c.bf16 %v699_v14, %v699_v14  ;;  %v697_v22 = vmax.f32 %v623_v15, 0.0  ;;  %v497_v24 = vpop.f32.mrf.mxu0  ;;  %v625_v28 = vpop.f32.mrf.mxu1 }
 0x105   :  { %988 = vst.msk [vmem:[%s1833_s3 + $0x78] sm:$0xf] %vm957_vm2, %v1185_v17  ;;  %v1183_v25 = vpack.c.bf16 %v665_v18, %v665_v18  ;;  %v668_v26 = vmax.f32 %v506_v19, 0.0  ;;  %v498_v27 = vadd.f32 %v1508_v34, %v497_v24  ;;  %v700_v30 = vmax.f32 %v634_v23, 0.0 }
 0x106   :  { %1020 = vst.msk [vmem:[%s1833_s3 + $0xf8] sm:$0xf] %vm957_vm2, %v1217_v21  ;;  %v1215_v29 = vpack.c.bf16 %v697_v22, %v697_v22  ;;  %v626_v31 = vadd.f32 %v1508_v34, %v625_v28 }
 0x107   :  { %986 = vst.msk [vmem:[%s1833_s3 + $0x70] sm:$0xf] %vm957_vm2, %v1183_v25  ;;  %v1186_v32 = vpack.c.bf16 %v668_v26, %v668_v26  ;;  %v666_v33 = vmax.f32 %v498_v27, 0.0  ;;  %v1218_v35 = vpack.c.bf16 %v700_v30, %v700_v30 }
 0x108   :  { %1018 = vst.msk [vmem:[%s1833_s3 + $0xf0] sm:$0xf] %vm957_vm2, %v1215_v29  ;;  %v698_v36 = vmax.f32 %v626_v31, 0.0 }
 0x109   :  { %989 = vst.msk [vmem:[%s1833_s3 + $0x7c] sm:$0xf] %vm957_vm2, %v1186_v32  ;;  %v1184_v34 = vpack.c.bf16 %v666_v33, %v666_v33  ;;  %1021 = vst.msk [vmem:[%s1833_s3 + $0xfc] sm:$0xf] %vm957_vm2, %v1218_v35 }
 0x10a   :  { %v1216_v37 = vpack.c.bf16 %v698_v36, %v698_v36 }
 0x10b   :  { %987 = vst.msk [vmem:[%s1833_s3 + $0x74] sm:$0xf] %vm957_vm2, %v1184_v34 }
 0x10c   :  { %1019 = vst.msk [vmem:[%s1833_s3 + $0xf4] sm:$0xf] %vm957_vm2, %v1216_v37 }

// kernel: bottleneck_forward.6
= control target key start
LH: loop header
LB: loop body
LE: loop exit
PB: predicated region body
PF: predicated region fallthrough
CT: control target
= control target key end

     0   :  { %vm104_vm0 = vcmask 1041408   ;;  %vm79_vm1 = vcmask 31744   ;;  %vm269_vm2 = vcmask 125952   ;;  %s500_s1 = inlined_call_operand.vmem [shape: bf16[4,16], index: 1, kind: input, shape index: {}]   ;;  %s501_s0 = inlined_call_operand.vmem [shape: bf16[128,4], index: 0, kind: input, shape index: {}]   ;;  %s502_s2 = inlined_call_operand.vmem [shape: f32[1,16], index: 2, kind: input, shape index: {}]   ;;  %s503_s3 = inlined_call_operand.vmem [shape: bf16[128,16], index: 3, kind: output, shape index: {}]  }
   0x1   :  { %v31_v0 = vld [vmem:[%s500_s1] sm:$0x3]  ;;  %v372_v4 = vld [vmem:[%s501_s0 + $0x8] sm:$0xff]   ;;  %v374_v6 = vld [vmem:[%s501_s0 + $0x10] sm:$0xff]  }
   0x2   :  { %368 = vmatprep.subr.msk.bf16.mxu0 %vm104_vm0, %v31_v0  ;;  %369 = vmatprep.subr.msk.bf16.mxu1 %vm104_vm0, %v31_v0  ;;  %v106_v1 = vsel %vm104_vm0, %v31_v0, 0  ;;  %v370_v2 = vld [vmem:[%s501_s0] sm:$0xff]   ;;  %v373_v5 = vld [vmem:[%s501_s0 + $0x28] sm:$0xff]   ;;  %v375_v7 = vld [vmem:[%s501_s0 + $0x30] sm:$0xff]  }
   0x3   :  { %349 = vmatpush3.bf16.msra.mxu0 %v106_v1  ;;  %367 = vmatpush3.bf16.msra.mxu1 %v106_v1  ;;  %v371_v3 = vld [vmem:[%s501_s0 + $0x20] sm:$0xff]   ;;  %v376_v8 = vld [vmem:[%s501_s0 + $0x18] sm:$0xff]  }
   0x4   :  { %350 = vmatprep.mubr.msk.bf16.mxu0 %vm79_vm1, %v370_v2  ;;  %358 = vmatprep.mubr.msk.bf16.mxu1 %vm79_vm1, %v371_v3  ;;  %v377_v9 = vld [vmem:[%s501_s0 + $0x38] sm:$0xff]   ;;  %v290_v10 = vld [vmem:[%s502_s2] ss:$0 sm:$0xff] }
   0x6   :  { %351 = vmatmul.mubr.msk.bf16.vlgmr.msra.gmra.mxu0 %vm79_vm1, %v372_v4  ;;  %359 = vmatmul.mubr.msk.bf16.vlgmr.msra.gmra.mxu1 %vm79_vm1, %v373_v5 }
   0x7   :  { %354 = vmatprep.mubr.msk.bf16.mxu0 %vm79_vm1, %v374_v6  ;;  %362 = vmatprep.mubr.msk.bf16.mxu1 %vm79_vm1, %v375_v7 }
   0xe   :  { %355 = vmatmul.mubr.msk.bf16.gmra.mxu0 %vm79_vm1, %v376_v8  ;;  %363 = vmatmul.mubr.msk.bf16.gmra.mxu1 %vm79_vm1, %v377_v9 }
  0xc6   :  { %v352_v11 = vpop.f32.mrf.mxu0  ;;  %v360_v13 = vpop.f32.mrf.mxu1 }
  0xc7   :  { %v151_v12 = vadd.f32 %v352_v11, %v290_v10  ;;  %v183_v14 = vadd.f32 %v360_v13, %v290_v10 }
  0xc8   :  { %v142_v15 = vpop.f32.mrf.mxu0  ;;  %v174_v18 = vpop.f32.mrf.mxu1 }
  0xc9   :  { %v325_v16 = vpack.c.bf16 %v151_v12, %v151_v12  ;;  %v143_v17 = vadd.f32 %v290_v10, %v142_v15  ;;  %v333_v19 = vpack.c.bf16 %v183_v14, %v183_v14  ;;  %v175_v20 = vadd.f32 %v290_v10, %v174_v18 }
  0xca   :  { %v353_v21 = vpop.f32.mrf.mxu0  ;;  %v361_v24 = vpop.f32.mrf.mxu1 }
  0xcb   :  { %272 = vst.msk [vmem:[%s503_s3 + $0x8] sm:$0xf] %vm269_vm2, %v325_v16  ;;  %v323_v22 = vpack.c.bf16 %v143_v17, %v143_v17  ;;  %v154_v23 = vadd.f32 %v353_v21, %v290_v10  ;;  %280 = vst.msk [vmem:[%s503_s3 + $0x28] sm:$0xf] %vm269_vm2, %v333_v19  ;;  %v331_v25 = vpack.c.bf16 %v175_v20, %v175_v20 }
  0xcc   :  { %v186_v26 = vadd.f32 %v361_v24, %v290_v10  ;;  %v145_v27 = vpop.f32.mrf.mxu0  ;;  %v177_v30 = vpop.f32.mrf.mxu1 }
  0xcd   :  { %270 = vst.msk [vmem:[%s503_s3] sm:$0xf] %vm269_vm2, %v323_v22  ;;  %v326_v28 = vpack.c.bf16 %v154_v23, %v154_v23  ;;  %v146_v29 = vadd.f32 %v290_v10, %v145_v27  ;;  %278 = vst.msk [vmem:[%s503_s3 + $0x20] sm:$0xf] %vm269_vm2, %v331_v25  ;;  %v178_v32 = vadd.f32 %v290_v10, %v177_v30 }
  0xce   :  { %v334_v31 = vpack.c.bf16 %v186_v26, %v186_v26  ;;  %v356_v33 = vpop.f32.mrf.mxu0  ;;  %v364_v36 = vpop.f32.mrf.mxu1 }
  0xcf   :  { %273 = vst.msk [vmem:[%s503_s3 + $0xc] sm:$0xf] %vm269_vm2, %v326_v28  ;;  %v324_v34 = vpack.c.bf16 %v146_v29, %v146_v29  ;;  %v167_v35 = vadd.f32 %v356_v33, %v290_v10  ;;  %v332_v37 = vpack.c.bf16 %v178_v32, %v178_v32  ;;  %v199_v38 = vadd.f32 %v364_v36, %v290_v10 }
  0xd0   :  { %281 = vst.msk [vmem:[%s503_s3 + $0x2c] sm:$0xf] %vm269_vm2, %v334_v31  ;;  %v158_v39 = vpop.f32.mrf.mxu0  ;;  %v190_v42 = vpop.f32.mrf.mxu1 }
  0xd1   :  { %271 = vst.msk [vmem:[%s503_s3 + $0x4] sm:$0xf] %vm269_vm2, %v324_v34  ;;  %v329_v40 = vpack.c.bf16 %v167_v35, %v167_v35  ;;  %v159_v41 = vadd.f32 %v290_v10, %v158_v39  ;;  %279 = vst.msk [vmem:[%s503_s3 + $0x24] sm:$0xf] %vm269_vm2, %v332_v37  ;;  %v337_v43 = vpack.c.bf16 %v199_v38, %v199_v38 }
  0xd2   :  { %v191_v44 = vadd.f32 %v290_v10, %v190_v42  ;;  %v357_v45 = vpop.f32.mrf.mxu0  ;;  %v365_v48 = vpop.f32.mrf.mxu1 }
  0xd3   :  { %276 = vst.msk [vmem:[%s503_s3 + $0x18] sm:$0xf] %vm269_vm2, %v329_v40  ;;  %v327_v46 = vpack.c.bf16 %v159_v41, %v159_v41  ;;  %v170_v47 = vadd.f32 %v357_v45, %v290_v10  ;;  %284 = vst.msk [vmem:[%s503_s3 + $0x38] sm:$0xf] %vm269_vm2, %v337_v43  ;;  %v202_v50 = vadd.f32 %v365_v48, %v290_v10 }
  0xd4   :  { %v335_v49 = vpack.c.bf16 %v191_v44, %v191_v44  ;;  %v161_v51 = vpop.f32.mrf.mxu0  ;;  %v193_v54 = vpop.f32.mrf.mxu1 }
  0xd5   :  { %274 = vst.msk [vmem:[%s503_s3 + $0x10] sm:$0xf] %vm269_vm2, %v327_v46  ;;  %v330_v52 = vpack.c.bf16 %v170_v47, %v170_v47  ;;  %v162_v53 = vadd.f32 %v290_v10, %v161_v51  ;;  %v338_v55 = vpack.c.bf16 %v202_v50, %v202_v50  ;;  %v194_v56 = vadd.f32 %v290_v10, %v193_v54 }
  0xd6   :  { %282 = vst.msk [vmem:[%s503_s3 + $0x30] sm:$0xf] %vm269_vm2, %v335_v49 }
  0xd7   :  { %277 = vst.msk [vmem:[%s503_s3 + $0x1c] sm:$0xf] %vm269_vm2, %v330_v52  ;;  %v328_v57 = vpack.c.bf16 %v162_v53, %v162_v53  ;;  %285 = vst.msk [vmem:[%s503_s3 + $0x3c] sm:$0xf] %vm269_vm2, %v338_v55  ;;  %v336_v58 = vpack.c.bf16 %v194_v56, %v194_v56 }
  0xd9   :  { %275 = vst.msk [vmem:[%s503_s3 + $0x14] sm:$0xf] %vm269_vm2, %v328_v57  ;;  %283 = vst.msk [vmem:[%s503_s3 + $0x34] sm:$0xf] %vm269_vm2, %v336_v58 }

// kernel: bottleneck_forward.7
= control target key start
LH: loop header
LB: loop body
LE: loop exit
PB: predicated region body
PF: predicated region fallthrough
CT: control target
= control target key end

     0   :  { %vm107_vm0 = vcmask 1041408   ;;  %vm82_vm1 = vcmask 31744   ;;  %vm336_vm2 = vcmask 125952   ;;  %s679_s1 = inlined_call_operand.vmem [shape: bf16[4,16], index: 1, kind: input, shape index: {}]   ;;  %s680_s0 = inlined_call_operand.vmem [shape: bf16[128,4], index: 0, kind: input, shape index: {}]   ;;  %s681_s3 = inlined_call_operand.vmem [shape: bf16[128,16], index: 3, kind: input, shape index: {}]   ;;  %s682_s2 = inlined_call_operand.vmem [shape: f32[1,16], index: 2, kind: input, shape index: {}]   ;;  %s683_s4 = inlined_call_operand.vmem [shape: bf16[128,16], index: 4, kind: output, shape index: {}]  }
   0x1   :  { %v34_v0 = vld [vmem:[%s679_s1] sm:$0x3]  ;;  %v478_v4 = vld [vmem:[%s680_s0 + $0x8] sm:$0xff]   ;;  %v480_v6 = vld [vmem:[%s680_s0 + $0x10] sm:$0xff]  }
   0x2   :  { %474 = vmatprep.subr.msk.bf16.mxu0 %vm107_vm0, %v34_v0  ;;  %475 = vmatprep.subr.msk.bf16.mxu1 %vm107_vm0, %v34_v0  ;;  %v109_v1 = vsel %vm107_vm0, %v34_v0, 0  ;;  %v476_v2 = vld [vmem:[%s680_s0] sm:$0xff]   ;;  %v479_v5 = vld [vmem:[%s680_s0 + $0x28] sm:$0xff]   ;;  %v481_v7 = vld [vmem:[%s680_s0 + $0x30] sm:$0xff]  }
   0x3   :  { %455 = vmatpush3.bf16.msra.mxu0 %v109_v1  ;;  %473 = vmatpush3.bf16.msra.mxu1 %v109_v1  ;;  %v477_v3 = vld [vmem:[%s680_s0 + $0x20] sm:$0xff]   ;;  %v482_v8 = vld [vmem:[%s680_s0 + $0x18] sm:$0xff]   ;;  %v438_v10 = vld [vmem:[%s681_s3 + $0x8] sm:$0xff]  }
   0x4   :  { %456 = vmatprep.mubr.msk.bf16.mxu0 %vm82_vm1, %v476_v2  ;;  %464 = vmatprep.mubr.msk.bf16.mxu1 %vm82_vm1, %v477_v3  ;;  %v483_v9 = vld [vmem:[%s680_s0 + $0x38] sm:$0xff]   ;;  %v442_v11 = vld [vmem:[%s681_s3 + $0x28] sm:$0xff]   ;;  %v407_v12 = vld [vmem:[%s681_s3] sm:$0xff]   ;;  %v412_v15 = vunpack.c.l.bf16 %v438_v10  ;;  %v413_v22 = vunpack.c.h.bf16 %v438_v10 }
   0x5   :  { %v556_v13 = vld [vmem:[%s681_s3 + $0x20] sm:$0xff]   ;;  %v566_v16 = vld [vmem:[%s681_s3 + $0x18] sm:$0xff]   ;;  %v428_v19 = vunpack.c.l.bf16 %v442_v11  ;;  %v408_v20 = vunpack.c.l.bf16 %v407_v12  ;;  %v577_v23 = vld [vmem:[%s681_s3 + $0x10] sm:$0xff]   ;;  %v429_v27 = vunpack.c.h.bf16 %v442_v11  ;;  %v409_v28 = vunpack.c.h.bf16 %v407_v12 }
   0x6   :  { %457 = vmatmul.mubr.msk.bf16.vlgmr.msra.gmra.mxu0 %vm82_vm1, %v478_v4  ;;  %465 = vmatmul.mubr.msk.bf16.vlgmr.msra.gmra.mxu1 %vm82_vm1, %v479_v5  ;;  %v561_v14 = vld [vmem:[%s682_s2] ss:$0 sm:$0xff]  ;;  %v571_v17 = vld [vmem:[%s681_s3 + $0x38] sm:$0xff]   ;;  %v424_v21 = vunpack.c.l.bf16 %v556_v13  ;;  %v582_v24 = vld [vmem:[%s681_s3 + $0x30] sm:$0xff]   ;;  %v425_v31 = vunpack.c.h.bf16 %v556_v13  ;;  %v420_v32 = vunpack.c.l.bf16 %v566_v16  ;;  %v416_v37 = vunpack.c.l.bf16 %v577_v23 }
   0x7   :  { %460 = vmatprep.mubr.msk.bf16.mxu0 %vm82_vm1, %v480_v6  ;;  %468 = vmatprep.mubr.msk.bf16.mxu1 %vm82_vm1, %v481_v7  ;;  %v436_v33 = vunpack.c.l.bf16 %v571_v17  ;;  %v432_v38 = vunpack.c.l.bf16 %v582_v24  ;;  %v421_v42 = vunpack.c.h.bf16 %v566_v16  ;;  %v437_v43 = vunpack.c.h.bf16 %v571_v17 }
   0x8   :  { %v417_v48 = vunpack.c.h.bf16 %v577_v23  ;;  %v433_v53 = vunpack.c.h.bf16 %v582_v24 }
   0xe   :  { %461 = vmatmul.mubr.msk.bf16.gmra.mxu0 %vm82_vm1, %v482_v8  ;;  %469 = vmatmul.mubr.msk.bf16.gmra.mxu1 %vm82_vm1, %v483_v9 }
  0xc6   :  { %v458_v18 = vpop.f32.mrf.mxu0  ;;  %v466_v26 = vpop.f32.mrf.mxu1 }
  0xc7   :  { %v154_v25 = vadd.f32 %v458_v18, %v561_v14  ;;  %v186_v29 = vadd.f32 %v466_v26, %v561_v14 }
  0xc8   :  { %v145_v30 = vpop.f32.mrf.mxu0  ;;  %v177_v36 = vpop.f32.mrf.mxu1 }
  0xc9   :  { %v242_v34 = vadd.f32 %v412_v15, %v154_v25  ;;  %v146_v35 = vadd.f32 %v561_v14, %v145_v30  ;;  %v250_v39 = vadd.f32 %v428_v19, %v186_v29  ;;  %v178_v40 = vadd.f32 %v561_v14, %v177_v36 }
  0xca   :  { %v459_v41 = vpop.f32.mrf.mxu0  ;;  %v467_v47 = vpop.f32.mrf.mxu1 }
  0xcb   :  { %v258_v44 = vmax.f32 %v242_v34, 0.0  ;;  %v240_v45 = vadd.f32 %v408_v20, %v146_v35  ;;  %v157_v46 = vadd.f32 %v459_v41, %v561_v14  ;;  %v266_v49 = vmax.f32 %v250_v39, 0.0 }
  0xcc   :  { %v248_v50 = vadd.f32 %v424_v21, %v178_v40  ;;  %v189_v51 = vadd.f32 %v467_v47, %v561_v14  ;;  %v148_v52 = vpop.f32.mrf.mxu0  ;;  %v180_v58 = vpop.f32.mrf.mxu1 }
  0xcd   :  { %v392_v54 = vpack.c.bf16 %v258_v44, %v258_v44  ;;  %v256_v55 = vmax.f32 %v240_v45, 0.0  ;;  %v243_v56 = vadd.f32 %v413_v22, %v157_v46  ;;  %v149_v57 = vadd.f32 %v561_v14, %v148_v52 }
  0xce   :  { %v400_v59 = vpack.c.bf16 %v266_v49, %v266_v49  ;;  %v264_v60 = vmax.f32 %v248_v50, 0.0  ;;  %v251_v61 = vadd.f32 %v429_v27, %v189_v51  ;;  %v181_v62 = vadd.f32 %v561_v14, %v180_v58  ;;  %v462_v63 = vpop.f32.mrf.mxu0  ;;  %v470_v4 = vpop.f32.mrf.mxu1 }
  0xcf   :  { %339 = vst.msk [vmem:[%s683_s4 + $0x8] sm:$0xf] %vm336_vm2, %v392_v54  ;;  %v390_v0 = vpack.c.bf16 %v256_v55, %v256_v55  ;;  %v259_v1 = vmax.f32 %v243_v56, 0.0  ;;  %v241_v2 = vadd.f32 %v409_v28, %v149_v57  ;;  %v170_v3 = vadd.f32 %v462_v63, %v561_v14 }
  0xd0   :  { %347 = vst.msk [vmem:[%s683_s4 + $0x28] sm:$0xf] %vm336_vm2, %v400_v59  ;;  %v398_v5 = vpack.c.bf16 %v264_v60, %v264_v60  ;;  %v267_v6 = vmax.f32 %v251_v61, 0.0  ;;  %v249_v7 = vadd.f32 %v425_v31, %v181_v62  ;;  %v202_v8 = vadd.f32 %v470_v4, %v561_v14  ;;  %v161_v9 = vpop.f32.mrf.mxu0  ;;  %v193_v15 = vpop.f32.mrf.mxu1 }
  0xd1   :  { %337 = vst.msk [vmem:[%s683_s4] sm:$0xf] %vm336_vm2, %v390_v0  ;;  %v393_v10 = vpack.c.bf16 %v259_v1, %v259_v1  ;;  %v257_v11 = vmax.f32 %v241_v2, 0.0  ;;  %v246_v12 = vadd.f32 %v420_v32, %v170_v3  ;;  %v162_v13 = vadd.f32 %v561_v14, %v161_v9 }
  0xd2   :  { %345 = vst.msk [vmem:[%s683_s4 + $0x20] sm:$0xf] %vm336_vm2, %v398_v5  ;;  %v401_v16 = vpack.c.bf16 %v267_v6, %v267_v6  ;;  %v265_v18 = vmax.f32 %v249_v7, 0.0  ;;  %v254_v19 = vadd.f32 %v436_v33, %v202_v8  ;;  %v194_v20 = vadd.f32 %v561_v14, %v193_v15  ;;  %v463_v21 = vpop.f32.mrf.mxu0  ;;  %v471_v28 = vpop.f32.mrf.mxu1 }
  0xd3   :  { %340 = vst.msk [vmem:[%s683_s4 + $0xc] sm:$0xf] %vm336_vm2, %v393_v10  ;;  %v391_v22 = vpack.c.bf16 %v257_v11, %v257_v11  ;;  %v262_v25 = vmax.f32 %v246_v12, 0.0  ;;  %v244_v26 = vadd.f32 %v416_v37, %v162_v13  ;;  %v173_v27 = vadd.f32 %v463_v21, %v561_v14 }
  0xd4   :  { %348 = vst.msk [vmem:[%s683_s4 + $0x2c] sm:$0xf] %vm336_vm2, %v401_v16  ;;  %v399_v29 = vpack.c.bf16 %v265_v18, %v265_v18  ;;  %v270_v30 = vmax.f32 %v254_v19, 0.0  ;;  %v252_v31 = vadd.f32 %v432_v38, %v194_v20  ;;  %v205_v32 = vadd.f32 %v471_v28, %v561_v14  ;;  %v164_v33 = vpop.f32.mrf.mxu0  ;;  %v196_v39 = vpop.f32.mrf.mxu1 }
  0xd5   :  { %338 = vst.msk [vmem:[%s683_s4 + $0x4] sm:$0xf] %vm336_vm2, %v391_v22  ;;  %v396_v34 = vpack.c.bf16 %v262_v25, %v262_v25  ;;  %v260_v35 = vmax.f32 %v244_v26, 0.0  ;;  %v247_v36 = vadd.f32 %v421_v42, %v173_v27  ;;  %v165_v37 = vadd.f32 %v561_v14, %v164_v33 }
  0xd6   :  { %346 = vst.msk [vmem:[%s683_s4 + $0x24] sm:$0xf] %vm336_vm2, %v399_v29  ;;  %v404_v38 = vpack.c.bf16 %v270_v30, %v270_v30  ;;  %v268_v40 = vmax.f32 %v252_v31, 0.0  ;;  %v255_v41 = vadd.f32 %v437_v43, %v205_v32  ;;  %v197_v44 = vadd.f32 %v561_v14, %v196_v39 }
  0xd7   :  { %343 = vst.msk [vmem:[%s683_s4 + $0x18] sm:$0xf] %vm336_vm2, %v396_v34  ;;  %v394_v42 = vpack.c.bf16 %v260_v35, %v260_v35  ;;  %v263_v45 = vmax.f32 %v247_v36, 0.0  ;;  %v245_v46 = vadd.f32 %v417_v48, %v165_v37 }
  0xd8   :  { %351 = vst.msk [vmem:[%s683_s4 + $0x38] sm:$0xf] %vm336_vm2, %v404_v38  ;;  %v402_v47 = vpack.c.bf16 %v268_v40, %v268_v40  ;;  %v271_v17 = vmax.f32 %v255_v41, 0.0  ;;  %v253_v14 = vadd.f32 %v433_v53, %v197_v44 }
  0xd9   :  { %341 = vst.msk [vmem:[%s683_s4 + $0x10] sm:$0xf] %vm336_vm2, %v394_v42  ;;  %v397_v43 = vpack.c.bf16 %v263_v45, %v263_v45  ;;  %v261_v49 = vmax.f32 %v245_v46, 0.0 }
  0xda   :  { %349 = vst.msk [vmem:[%s683_s4 + $0x30] sm:$0xf] %vm336_vm2, %v402_v47  ;;  %v405_v23 = vpack.c.bf16 %v271_v17, %v271_v17  ;;  %v269_v48 = vmax.f32 %v253_v14, 0.0 }
  0xdb   :  { %344 = vst.msk [vmem:[%s683_s4 + $0x1c] sm:$0xf] %vm336_vm2, %v397_v43  ;;  %v395_v24 = vpack.c.bf16 %v261_v49, %v261_v49 }
  0xdc   :  { %352 = vst.msk [vmem:[%s683_s4 + $0x3c] sm:$0xf] %vm336_vm2, %v405_v23  ;;  %v403_v50 = vpack.c.bf16 %v269_v48, %v269_v48 }
  0xdd   :  { %342 = vst.msk [vmem:[%s683_s4 + $0x14] sm:$0xf] %vm336_vm2, %v395_v24 }
  0xde   :  { %350 = vst.msk [vmem:[%s683_s4 + $0x34] sm:$0xf] %vm336_vm2, %v403_v50 }

// kernel: bottleneck_forward.5
= control target key start
LH: loop header
LB: loop body
LE: loop exit
PB: predicated region body
PF: predicated region fallthrough
CT: control target
= control target key end

     0   :  { %s2293_s21 = smov 0   ;;  %s2295_s22 = smov 0   ;;  %s2618_s0 = inlined_call_operand.vmem [shape: bf16[2,9,9,4], index: 0, kind: input, shape index: {}]   ;;  %s2619_s1 = inlined_call_operand.vmem [shape: bf16[2,9,9,4], index: 1, kind: input, shape index: {}]   ;;  %s2620_s2 = inlined_call_operand.vmem [shape: bf16[2,9,9,4], index: 2, kind: input, shape index: {}]   ;;  %s2621_s3 = inlined_call_operand.vmem [shape: bf16[2,9,9,4], index: 3, kind: input, shape index: {}]   ;;  %s2622_s4 = inlined_call_operand.vmem [shape: bf16[9,4,4], index: 4, kind: input, shape index: {}]   ;;  %s2623_s5 = inlined_call_operand.vmem [shape: f32[1,4], index: 5, kind: input, shape index: {}]   ;;  %s2624_s6 = inlined_call_operand.vmem [shape: bf16[2,8,8,4], index: 6, kind: output, shape index: {}]  }
   0x1   :  { %s2297_s23 = smov 0  }
   0x2 LB: > { %s28_s24 = sadd.s32 1, %s2252_s22  ;;  %p1915_p0 = scmp.ge.s32.totalorder %s2256_s23, 1  ;;  %s2256_s23 = sphi %s2297_s23, %s16_s23   ;;  %s2252_s22 = sphi %s2295_s22, %s2628_s22   ;;  %s2248_s21 = sphi %s2293_s21, %s2627_s21  }
   0x3   : > { %p30_p1 = scmp.ge.s32.totalorder %s28_s24, 2  ;;  %p256_p2 = scmp.lt.s32.totalorder %s2256_s23, 3 }
   0x5   : > { %s2630_s24 = smov (%p30_p1, %s28_s24), 0  ;;  %p257_p3 = pnand %p1915_p0, %p256_p2 }
   0x6   : > { %p305_p4 = scmp.lt.s32.totalorder (!%p257_p3), %s2248_s21, 1 }
   0x7   : > { %260 = sbr.rel (%p257_p3) target bundleno = 301 (0x12d), region = 44 }
   0xc   : > { %v1922_v0 = vld [vmem:[%s2622_s4 + $0x2] sm:$0x3]  ;;  %vm394_vm0 = vcmask 1041408   ;;  %v348_v2 = vld [vmem:[%s2622_s4] sm:$0x3]  ;;  %s2632_s21 = smov (!%p305_p4, %s2248_s21), 1 }
   0xd   : > { %2176 = vmatprep.subr.msk.bf16.mxu1 %vm394_vm0, %v1922_v0  ;;  %2175 = vmatprep.subr.msk.bf16.mxu0 %vm394_vm0, %v1922_v0  ;;  %v396_v1 = vsel %vm394_vm0, %v1922_v0, 0  ;;  %v1939_v3 = vld [vmem:[%s2622_s4 + $0x4] sm:$0x3]  ;;  %s2328_s7 = smul.u32 72, %s2632_s21  ;;  %vm381_vm1 = vcmask 31744   ;;  %v496_v4 = vsel %vm394_vm0, %v348_v2, 0 }
   0xe   : > { %2174 = vmatpush3.bf16.msra.mxu1 %v396_v1  ;;  %2084 = vmatpush3.bf16.msra.mxu0 %v396_v1  ;;  %v721_v5 = vsel %vm394_vm0, %v1939_v3, 0  ;;  %v1948_v7 = vld [vmem:[%s2622_s4 + $0x6] sm:$0x3]  ;;  %v1957_v8 = vld [vmem:[%s2622_s4 + $0x8] sm:$0x3]  ;;  %s2037_s14 = sshll.u32 %s2632_s21, 5 }
   0xf   : > { %2177 = vmatprep.subr.msk.bf16.mxu1 %vm394_vm0, %v348_v2  ;;  %2178 = vmatprep.subr.msk.bf16.mxu0 %vm394_vm0, %v1939_v3  ;;  %s2334_s10 = scalar_lea.vmem %s2619_s1, %s2328_s7  ;;  %vm579_vm2 = vsmask.f32 3328  ;;  %vm580_vm3 = vsmask.f32 7440  ;;  %s2352_s17 = scalar_lea.vmem %s2618_s0, %s2328_s7  ;;  %v841_v13 = vsel %vm394_vm0, %v1948_v7, 0  ;;  %v2361_v14 = vsel %vm394_vm0, %v1957_v8, 0 }
  0x10   : > { %v2210_v6 = vld [vmem:[%s2334_s10] ss:$8 sps:$4 sm:$0xff]   ;;  %v2212_v10 = vld [vmem:[%s2334_s10 + $0x10] ss:$8 sps:$4 sm:$0xff]   ;;  %v564_v16 = vld [vmem:[%s2352_s17 + $0x4] sm:$0x1]  ;;  %s2415_s28 = scalar_lea.vmem %s2620_s2, %s2328_s7  ;;  %s2431_s8 = scalar_lea.vmem %s2621_s3, %s2328_s7 }
  0x11   : > { %v2211_v9 = vld [vmem:[%s2334_s10 + $0x20] ss:$8 sps:$4 sm:$0xff]   ;;  %2085 = vmatprep.mubr.msk.bf16.mxu0 %vm381_vm1, %v2210_v6  ;;  %v2213_v11 = vld [vmem:[%s2334_s10 + $0x30] ss:$8 sps:$4 sm:$0xff]   ;;  %v566_v19 = vld [vmem:[%s2352_s17 + $0xc] sm:$0x1]  ;;  %s2585_s21 = scalar_lea.vmem %s2624_s6, %s2037_s14 }
  0x12   : > { %2089 = vmatprep.mubr.msk.bf16.mxu1 %vm381_vm1, %v2211_v9  ;;  %2086 = vmatmul.mubr.msk.bf16.vlgmr.msra.gmra.mxu0 %vm381_vm1, %v2212_v10  ;;  %v2214_v12 = vld [vmem:[%s2352_s17] ss:$8 sps:$4 sm:$0xff]   ;;  %v2215_v18 = vld [vmem:[%s2352_s17 + $0x10] ss:$8 sps:$4 sm:$0xff]   ;;  %v592_v22 = vshll.u32 %v564_v16, 16  ;;  %v606_v25 = vshll.u32 %v566_v19, 16  ;;  %vm2382_vm4 = vmor %vm579_vm2, %vm580_vm3 }
  0x13   : > { %2090 = vmatmul.mubr.msk.bf16.vlgmr.msra.gmra.mxu1 %vm381_vm1, %v2213_v11  ;;  %2104 = vmatpush3.bf16.msra.mxu0 %v721_v5  ;;  %v563_v15 = vld [vmem:[%s2352_s17] sm:$0xf]  ;;  %v565_v17 = vld [vmem:[%s2352_s17 + $0x8] sm:$0xf]  ;;  %v567_v26 = vld [vmem:[%s2352_s17 + $0x10] sm:$0xf] }
  0x14   : > { %2094 = vmatpush3.bf16.msra.mxu1 %v496_v4  ;;  %2095 = vmatprep.mubr.msk.bf16.mxu1 %vm381_vm1, %v2214_v12  ;;  %v583_v20 = vshrl.u32 %v563_v15, 16  ;;  %v586_v21 = vshll.u32 %v563_v15, 16  ;;  %v597_v23 = vshrl.u32 %v565_v17, 16  ;;  %v600_v24 = vshll.u32 %v565_v17, 16  ;;  %v568_v27 = vld [vmem:[%s2352_s17 + $0x14] sm:$0x1] }
  0x15   : > { %2179 = vmatprep.subr.msk.bf16.mxu1 %vm394_vm0, %v1948_v7  ;;  %2180 = vmatprep.subr.msk.bf16.mxu0 %vm394_vm0, %v1957_v8  ;;  %v594_v30 = vrot.slane %v592_v22, 5  ;;  %v569_v32 = vld [vmem:[%s2352_s17 + $0x18] sm:$0xf]  ;;  %v608_v34 = vrot.slane %v606_v25, 5  ;;  %v570_v35 = vld [vmem:[%s2352_s17 + $0x1c] sm:$0x1] }
  0x16   : > { %v585_v28 = vrot.slane %v583_v20, 4  ;;  %v588_v29 = vrot.slane %v586_v21, 5  ;;  %v599_v31 = vrot.slane %v597_v23, 4  ;;  %v602_v33 = vrot.slane %v600_v24, 5  ;;  %v2378_v38 = vld [vmem:[%s2622_s4 + $0xa] sm:$0x3] }
  0x17   : > { %v611_v36 = vshrl.u32 %v567_v26, 16  ;;  %v614_v37 = vshll.u32 %v567_v26, 16  ;;  %v620_v40 = vshll.u32 %v568_v27, 16  ;;  %v625_v41 = vshrl.u32 %v569_v32, 16  ;;  %v2216_v52 = vld [vmem:[%s2352_s17 + $0x20] ss:$8 sps:$4 sm:$0xff]  }
  0x18   : > { %v589_v39 = vor.u32 %v588_v29, %v585_v28  ;;  %v628_v42 = vshll.u32 %v569_v32, 16  ;;  %v603_v44 = vor.u32 %v602_v33, %v599_v31  ;;  %v634_v47 = vshll.u32 %v570_v35, 16  ;;  %v2217_v58 = vld [vmem:[%s2352_s17 + $0x30] ss:$8 sps:$4 sm:$0xff]   ;;  %v571_v59 = vld [vmem:[%s2352_s17 + $0x20] sm:$0xf] }
  0x19   : > { %v613_v45 = vrot.slane %v611_v36, 4  ;;  %v616_v46 = vrot.slane %v614_v37, 5  ;;  %v622_v49 = vrot.slane %v620_v40, 5  ;;  %v627_v50 = vrot.slane %v625_v41, 4  ;;  %v572_v60 = vld [vmem:[%s2352_s17 + $0x24] sm:$0x1] }
  0x1a   : > { %v590_v48 = vrot.slane %v589_v39, 4  ;;  %v630_v51 = vrot.slane %v628_v42, 5  ;;  %v604_v53 = vrot.slane %v603_v44, 4  ;;  %v636_v55 = vrot.slane %v634_v47, 5  ;;  %v573_v63 = vld [vmem:[%s2352_s17 + $0x28] sm:$0xf] }
  0x1b   : > { %2096 = vmatmul.mubr.msk.bf16.vlgmr.msra.gmra.mxu1 %vm381_vm1, %v2215_v18  ;;  %v617_v54 = vor.u32 %v616_v46, %v613_v45  ;;  %v574_v0 = vld [vmem:[%s2352_s17 + $0x2c] sm:$0x1]  ;;  %v639_v1 = vshrl.u32 %v571_v59, 16  ;;  %v642_v4 = vshll.u32 %v571_v59, 16  ;;  %v648_v5 = vshll.u32 %v572_v60, 16 }
  0x1c   : > { %2114 = vmatpush3.bf16.msra.mxu1 %v841_v13  ;;  %v595_v56 = vsel %vm2382_vm4, %v590_v48, %v594_v30  ;;  %v631_v57 = vor.u32 %v630_v51, %v627_v50  ;;  %2099 = vmatprep.mubr.msk.bf16.mxu1 %vm381_vm1, %v2216_v52  ;;  %v609_v61 = vsel %vm2382_vm4, %v604_v53, %v608_v34  ;;  %v575_v6 = vld [vmem:[%s2352_s17 + $0x30] sm:$0xf]  ;;  %v653_v9 = vshrl.u32 %v573_v63, 16  ;;  %v576_v11 = vld [vmem:[%s2352_s17 + $0x34] sm:$0x1] }
  0x1d   : > { %2181 = vmatprep.subr.msk.bf16.mxu1 %vm394_vm0, %v2378_v38  ;;  %v618_v62 = vrot.slane %v617_v54, 4  ;;  %v1940_v2 = vcombine.low %v595_v56, %v609_v61  ;;  %v641_v8 = vrot.slane %v639_v1, 4  ;;  %v656_v10 = vshll.u32 %v573_v63, 16  ;;  %v577_v17 = vld [vmem:[%s2352_s17 + $0x38] sm:$0xf] }
  0x1e   : > { %v632_v3 = vrot.slane %v631_v57, 4  ;;  %v644_v13 = vrot.slane %v642_v4, 5  ;;  %v650_v15 = vrot.slane %v648_v5, 5  ;;  %v662_v16 = vshll.u32 %v574_v0, 16  ;;  %v1983_v18 = vld [vmem:[%s2622_s4 + $0xc] sm:$0x3] }
  0x1f   : > { %v623_v7 = vsel %vm2382_vm4, %v618_v62, %v622_v49  ;;  %2105 = vmatprep.mubr.msk.bf16.mxu0 %vm381_vm1, %v1940_v2  ;;  %v655_v20 = vrot.slane %v653_v9, 4  ;;  %v658_v21 = vrot.slane %v656_v10, 5  ;;  %v578_v22 = vld [vmem:[%s2352_s17 + $0x3c] sm:$0x1]  ;;  %v667_v23 = vshrl.u32 %v575_v6, 16 }
  0x20   : > { %v637_v12 = vsel %vm2382_vm4, %v632_v3, %v636_v55  ;;  %v645_v24 = vor.u32 %v644_v13, %v641_v8  ;;  %v664_v25 = vrot.slane %v662_v16, 5  ;;  %v670_v26 = vshll.u32 %v575_v6, 16  ;;  %v2218_v35 = vld [vmem:[%s2415_s28] ss:$8 sps:$4 sm:$0xff]   ;;  %v2219_v44 = vld [vmem:[%s2415_s28 + $0x10] ss:$8 sps:$4 sm:$0xff]  }
  0x21   : > { %v1941_v19 = vcombine.low %v623_v7, %v637_v12  ;;  %v676_v27 = vshll.u32 %v576_v11, 16  ;;  %v659_v28 = vor.u32 %v658_v21, %v655_v20  ;;  %v669_v29 = vrot.slane %v667_v23, 4  ;;  %v2000_v51 = vld [vmem:[%s2622_s4 + $0xe] sm:$0x3]  ;;  %v2222_v53 = vld [vmem:[%s2415_s28 + $0x20] ss:$8 sps:$4 sm:$0xff]  }
  0x22   : > { %v681_v30 = vshrl.u32 %v577_v17, 16  ;;  %v684_v31 = vshll.u32 %v577_v17, 16  ;;  %v646_v32 = vrot.slane %v645_v24, 4  ;;  %v672_v33 = vrot.slane %v670_v26, 5  ;;  %v2223_v57 = vld [vmem:[%s2415_s28 + $0x30] ss:$8 sps:$4 sm:$0xff]  }
  0x23   : > { %2100 = vmatmul.mubr.msk.bf16.gmra.mxu1 %vm381_vm1, %v2217_v58  ;;  %2106 = vmatmul.mubr.msk.bf16.vlgmr.msra.gmra.mxu0 %vm381_vm1, %v1941_v19  ;;  %v690_v34 = vshll.u32 %v578_v22, 16  ;;  %v660_v36 = vrot.slane %v659_v28, 4  ;;  %v678_v42 = vrot.slane %v676_v27, 5  ;;  %v1191_v49 = vsel %vm394_vm0, %v2378_v38, 0  ;;  %v2220_v38 = vld [vmem:[%s2431_s8] ss:$8 sps:$4 sm:$0xff]  }
  0x24   : > { %2124 = vmatpush3.bf16.msra.mxu0 %v2361_v14  ;;  %v683_v37 = vrot.slane %v681_v30, 4  ;;  %v686_v39 = vrot.slane %v684_v31, 5  ;;  %v651_v40 = vsel %vm2382_vm4, %v646_v32, %v650_v15  ;;  %v673_v41 = vor.u32 %v672_v33, %v669_v29  ;;  %2115 = vmatprep.mubr.msk.bf16.mxu1 %vm381_vm1, %v2218_v35  ;;  %v1036_v58 = vld [vmem:[%s2415_s28] sm:$0xf]  ;;  %v1037_v59 = vld [vmem:[%s2415_s28 + $0x4] sm:$0x1] }
  0x25   : > { %2182 = vmatprep.subr.msk.bf16.mxu0 %vm394_vm0, %v1983_v18  ;;  %v665_v14 = vsel %vm2382_vm4, %v660_v36, %v664_v25  ;;  %v692_v46 = vrot.slane %v690_v34, 5  ;;  %v1313_v56 = vsel %vm394_vm0, %v1983_v18, 0  ;;  %v1038_v60 = vld [vmem:[%s2415_s28 + $0x8] sm:$0xf]  ;;  %v1039_v61 = vld [vmem:[%s2415_s28 + $0xc] sm:$0x1] }
  0x26   : > { %v687_v45 = vor.u32 %v686_v39, %v683_v37  ;;  %v1942_v47 = vcombine.low %v651_v40, %v665_v14  ;;  %v674_v48 = vrot.slane %v673_v41, 4  ;;  %v1053_v62 = vshrl.u32 %v1036_v58, 16  ;;  %v1040_v2 = vld [vmem:[%s2415_s28 + $0x10] sm:$0xf]  ;;  %v1041_v6 = vld [vmem:[%s2415_s28 + $0x14] sm:$0x1] }
  0x27   : > { %v1056_v63 = vshll.u32 %v1036_v58, 16  ;;  %v1062_v0 = vshll.u32 %v1037_v59, 16  ;;  %v1067_v1 = vshrl.u32 %v1038_v60, 16  ;;  %v2221_v3 = vld [vmem:[%s2431_s8 + $0x10] ss:$8 sps:$4 sm:$0xff]   ;;  %v1070_v4 = vshll.u32 %v1038_v60, 16 }
  0x28   : > { %v688_v50 = vrot.slane %v687_v45, 4  ;;  %2109 = vmatprep.mubr.msk.bf16.mxu0 %vm381_vm1, %v1942_v47  ;;  %v679_v52 = vsel %vm2382_vm4, %v674_v48, %v678_v42  ;;  %v1076_v5 = vshll.u32 %v1039_v61, 16  ;;  %v1042_v7 = vld [vmem:[%s2415_s28 + $0x18] sm:$0xf]  ;;  %v2224_v8 = vld [vmem:[%s2431_s8 + $0x20] ss:$8 sps:$4 sm:$0xff]  }
  0x29   : > { %v1055_v9 = vrot.slane %v1053_v62, 4  ;;  %v1058_v10 = vrot.slane %v1056_v63, 5  ;;  %v1064_v11 = vrot.slane %v1062_v0, 5  ;;  %v1069_v12 = vrot.slane %v1067_v1, 4  ;;  %v1043_v13 = vld [vmem:[%s2415_s28 + $0x1c] sm:$0x1] }
  0x2a   : > { %v693_v54 = vsel %vm2382_vm4, %v688_v50, %v692_v46  ;;  %v1072_v15 = vrot.slane %v1070_v4, 5  ;;  %v1078_v16 = vrot.slane %v1076_v5, 5  ;;  %v1081_v17 = vshrl.u32 %v1040_v2, 16  ;;  %v2468_v27 = vld [vmem:[%s2622_s4 + $0x10] sm:$0x3] }
  0x2b   : > { %2116 = vmatmul.mubr.msk.bf16.vlgmr.msra.gmra.mxu1 %vm381_vm1, %v2219_v44  ;;  %v1943_v55 = vcombine.low %v679_v52, %v693_v54  ;;  %v1084_v18 = vshll.u32 %v1040_v2, 16  ;;  %v1059_v19 = vor.u32 %v1058_v10, %v1055_v9  ;;  %v1090_v20 = vshll.u32 %v1041_v6, 16  ;;  %v1044_v39 = vld [vmem:[%s2415_s28 + $0x20] sm:$0xf]  ;;  %v1045_v40 = vld [vmem:[%s2415_s28 + $0x24] sm:$0x1] }
  0x2c   : > { %2134 = vmatpush3.bf16.msra.mxu1 %v1191_v49  ;;  %2119 = vmatprep.mubr.msk.bf16.mxu1 %vm381_vm1, %v2222_v53  ;;  %v1095_v21 = vshrl.u32 %v1042_v7, 16  ;;  %v1098_v22 = vshll.u32 %v1042_v7, 16  ;;  %v1073_v23 = vor.u32 %v1072_v15, %v1069_v12  ;;  %v1083_v24 = vrot.slane %v1081_v17, 4  ;;  %v1046_v41 = vld [vmem:[%s2415_s28 + $0x28] sm:$0xf] }
  0x2d   : > { %2183 = vmatprep.subr.msk.bf16.mxu1 %vm394_vm0, %v2000_v51  ;;  %2110 = vmatmul.mubr.msk.bf16.gmra.mxu0 %vm381_vm1, %v1943_v55  ;;  %v1086_v25 = vrot.slane %v1084_v18, 5  ;;  %v1104_v26 = vshll.u32 %v1043_v13, 16  ;;  %v1060_v28 = vrot.slane %v1059_v19, 4  ;;  %v1433_v31 = vsel %vm394_vm0, %v2000_v51, 0  ;;  %v2225_v42 = vld [vmem:[%s2431_s8 + $0x30] ss:$8 sps:$4 sm:$0xff]  }
  0x2e   : > { %2125 = vmatprep.mubr.msk.bf16.mxu0 %vm381_vm1, %v2220_v38  ;;  %v1097_v29 = vrot.slane %v1095_v21, 4  ;;  %v1100_v30 = vrot.slane %v1098_v22, 5  ;;  %v1074_v32 = vrot.slane %v1073_v23, 4  ;;  %v1092_v34 = vrot.slane %v1090_v20, 5  ;;  %v1047_v45 = vld [vmem:[%s2415_s28 + $0x2c] sm:$0x1] }
  0x2f   : > { %v1087_v33 = vor.u32 %v1086_v25, %v1083_v24  ;;  %v1106_v35 = vrot.slane %v1104_v26, 5  ;;  %v1065_v36 = vsel %vm2382_vm4, %v1060_v28, %v1064_v11  ;;  %v1109_v46 = vshrl.u32 %v1044_v39, 16  ;;  %v2226_v50 = vld [vmem:[%s2352_s17 + $0x8] ss:$8 sps:$4 sm:$0xff]   ;;  %v1050_v62 = vld [vmem:[%s2415_s28 + $0x38] sm:$0xf] }
  0x30   : > { %v1101_v37 = vor.u32 %v1100_v30, %v1097_v29  ;;  %v1079_v44 = vsel %vm2382_vm4, %v1074_v32, %v1078_v16  ;;  %v1112_v47 = vshll.u32 %v1044_v39, 16  ;;  %v1118_v51 = vshll.u32 %v1045_v40, 16  ;;  %v1048_v53 = vld [vmem:[%s2415_s28 + $0x30] sm:$0xf]  ;;  %v1051_v2 = vld [vmem:[%s2415_s28 + $0x3c] sm:$0x1] }
  0x31   : > { %v1088_v14 = vrot.slane %v1087_v33, 4  ;;  %v1967_v48 = vcombine.low %v1065_v36, %v1079_v44  ;;  %v1123_v52 = vshrl.u32 %v1046_v41, 16  ;;  %v1111_v38 = vrot.slane %v1109_v46, 4  ;;  %v2227_v16 = vld [vmem:[%s2352_s17 + $0x18] ss:$8 sps:$4 sm:$0xff]  }
  0x32   : > { %v1102_v49 = vrot.slane %v1101_v37, 4  ;;  %v1114_v55 = vrot.slane %v1112_v47, 5  ;;  %v1120_v59 = vrot.slane %v1118_v51, 5  ;;  %v1132_v61 = vshll.u32 %v1047_v45, 16  ;;  %v2228_v29 = vld [vmem:[%s2352_s17 + $0x28] ss:$8 sps:$4 sm:$0xff]  }
  0x33   : > { %2120 = vmatmul.mubr.msk.bf16.gmra.mxu1 %vm381_vm1, %v2223_v57  ;;  %v1093_v54 = vsel %vm2382_vm4, %v1088_v14, %v1092_v34  ;;  %v1049_v57 = vld [vmem:[%s2415_s28 + $0x34] sm:$0x1]  ;;  %v1125_v60 = vrot.slane %v1123_v52, 4  ;;  %v1140_v5 = vshll.u32 %v1048_v53, 16  ;;  %v1151_v7 = vshrl.u32 %v1050_v62, 16 }
  0x34   : > { %2135 = vmatprep.mubr.msk.bf16.mxu1 %vm381_vm1, %v1967_v48  ;;  %v1107_v58 = vsel %vm2382_vm4, %v1102_v49, %v1106_v35  ;;  %v1115_v0 = vor.u32 %v1114_v55, %v1111_v38  ;;  %v1134_v4 = vrot.slane %v1132_v61, 5  ;;  %v1146_v6 = vshll.u32 %v1049_v57, 16  ;;  %v2009_v30 = vld [vmem:[%s2352_s17 + $0x8] sm:$0xf]  ;;  %v2010_v33 = vld [vmem:[%s2352_s17 + $0xc] sm:$0x1] }
  0x35   : > { %2126 = vmatmul.mubr.msk.bf16.vlgmr.msra.gmra.mxu0 %vm381_vm1, %v2221_v3  ;;  %v1968_v63 = vcombine.low %v1093_v54, %v1107_v58  ;;  %v1137_v3 = vshrl.u32 %v1048_v53, 16  ;;  %v1154_v11 = vshll.u32 %v1050_v62, 16  ;;  %v1142_v12 = vrot.slane %v1140_v5, 5  ;;  %v2230_v32 = vld [vmem:[%s2334_s10 + $0x8] ss:$8 sps:$4 sm:$0xff]  }
  0x36   : > { %2144 = vmatpush3.bf16.msra.mxu0 %v1313_v56  ;;  %2129 = vmatprep.mubr.msk.bf16.mxu0 %vm381_vm1, %v2224_v8  ;;  %v1126_v56 = vshll.u32 %v1046_v41, 16  ;;  %v1116_v8 = vrot.slane %v1115_v0, 4  ;;  %v1153_v13 = vrot.slane %v1151_v7, 4  ;;  %v1160_v15 = vshll.u32 %v1051_v2, 16  ;;  %v2011_v34 = vld [vmem:[%s2352_s17 + $0x10] sm:$0xf] }
  0x37   : > { %2184 = vmatprep.subr.msk.bf16.mxu0 %vm394_vm0, %v2468_v27  ;;  %v1139_v10 = vrot.slane %v1137_v3, 4  ;;  %v1156_v19 = vrot.slane %v1154_v11, 5  ;;  %v1148_v21 = vrot.slane %v1146_v6, 5  ;;  %v1663_v25 = vsel %vm394_vm0, %v2468_v27, 0  ;;  %v2012_v37 = vld [vmem:[%s2352_s17 + $0x14] sm:$0x1] }
  0x38   : > { %v1128_v1 = vrot.slane %v1126_v56, 5  ;;  %v1121_v17 = vsel %vm2382_vm4, %v1116_v8, %v1120_v59  ;;  %v1162_v24 = vrot.slane %v1160_v15, 5  ;;  %v1525_v35 = vshrl.u32 %v2009_v30, 16  ;;  %v2013_v45 = vld [vmem:[%s2352_s17 + $0x18] sm:$0xf] }
  0x39   : > { %v1143_v20 = vor.u32 %v1142_v12, %v1139_v10  ;;  %v1157_v23 = vor.u32 %v1156_v19, %v1153_v13  ;;  %v1528_v39 = vshll.u32 %v2009_v30, 16  ;;  %v1534_v27 = vshll.u32 %v2010_v33, 16  ;;  %v2229_v51 = vld [vmem:[%s2352_s17 + $0x38] ss:$8 sps:$4 sm:$0xff]   ;;  %v2016_v38 = vld [vmem:[%s2352_s17 + $0x24] sm:$0x1] }
  0x3a   : > { %v1129_v9 = vor.u32 %v1128_v1, %v1125_v60  ;;  %v1539_v40 = vshrl.u32 %v2011_v34, 16  ;;  %v1542_v44 = vshll.u32 %v2011_v34, 16  ;;  %v1548_v14 = vshll.u32 %v2012_v37, 16  ;;  %v2015_v54 = vld [vmem:[%s2352_s17 + $0x20] sm:$0xf] }
  0x3b   : > { %2136 = vmatmul.mubr.msk.bf16.vlgmr.msra.gmra.mxu1 %vm381_vm1, %v1968_v63  ;;  %v1144_v28 = vrot.slane %v1143_v20, 4  ;;  %v1530_v47 = vrot.slane %v1528_v39, 5  ;;  %v1536_v48 = vrot.slane %v1534_v27, 5  ;;  %v1553_v56 = vshrl.u32 %v2013_v45, 16  ;;  %v2231_v63 = vld [vmem:[%s2334_s10 + $0x18] ss:$8 sps:$4 sm:$0xff]  }
  0x3c   : > { %2154 = vmatpush3.bf16.msra.mxu1 %v1433_v31  ;;  %v1130_v18 = vrot.slane %v1129_v9, 4  ;;  %v1158_v31 = vrot.slane %v1157_v23, 4  ;;  %v1541_v49 = vrot.slane %v1539_v40, 4  ;;  %v1544_v52 = vrot.slane %v1542_v44, 5  ;;  %v2232_v6 = vld [vmem:[%s2334_s10 + $0x28] ss:$8 sps:$4 sm:$0xff]  }
  0x3d   : > { %2130 = vmatmul.mubr.msk.bf16.gmra.mxu0 %vm381_vm1, %v2225_v42  ;;  %v1149_v36 = vsel %vm2382_vm4, %v1144_v28, %v1148_v21  ;;  %v1527_v42 = vrot.slane %v1525_v35, 4  ;;  %v1550_v53 = vrot.slane %v1548_v14, 5  ;;  %v1556_v57 = vshll.u32 %v2013_v45, 16  ;;  %v2017_v11 = vld [vmem:[%s2352_s17 + $0x28] sm:$0xf] }
  0x3e   : > { %2145 = vmatprep.mubr.msk.bf16.mxu0 %vm381_vm1, %v2226_v50  ;;  %v1135_v22 = vsel %vm2382_vm4, %v1130_v18, %v1134_v4  ;;  %v1163_v41 = vsel %vm2382_vm4, %v1158_v31, %v1162_v24  ;;  %v2014_v50 = vld [vmem:[%s2352_s17 + $0x1c] sm:$0x1]  ;;  %v1545_v59 = vor.u32 %v1544_v52, %v1541_v49  ;;  %v1567_v60 = vshrl.u32 %v2015_v54, 16  ;;  %v2018_v15 = vld [vmem:[%s2352_s17 + $0x2c] sm:$0x1] }
  0x3f   : > { %v1969_v26 = vcombine.low %v1121_v17, %v1135_v22  ;;  %v1970_v46 = vcombine.low %v1149_v36, %v1163_v41  ;;  %v1531_v55 = vor.u32 %v1530_v47, %v1527_v42  ;;  %v1562_v58 = vshll.u32 %v2014_v50, 16  ;;  %v2020_v17 = vld [vmem:[%s2352_s17 + $0x34] sm:$0x1]  ;;  %v2021_v22 = vld [vmem:[%s2352_s17 + $0x38] sm:$0xf] }
  0x40   : > { %v1570_v61 = vshll.u32 %v2015_v54, 16  ;;  %v1576_v62 = vshll.u32 %v2016_v38, 16  ;;  %v1555_v1 = vrot.slane %v1553_v56, 4  ;;  %v1558_v2 = vrot.slane %v1556_v57, 5  ;;  %v2022_v28 = vld [vmem:[%s2352_s17 + $0x3c] sm:$0x1] }
  0x41   : > { %2139 = vmatprep.mubr.msk.bf16.mxu1 %vm381_vm1, %v1969_v26  ;;  %v1532_v0 = vrot.slane %v1531_v55, 4  ;;  %v1546_v3 = vrot.slane %v1545_v59, 4  ;;  %v1569_v4 = vrot.slane %v1567_v60, 4  ;;  %v1564_v9 = vrot.slane %v1562_v58, 5  ;;  %v2023_v33 = vld [vmem:[%s2352_s17 + $0x40] sm:$0xf] }
  0x42   : > { %v1572_v5 = vrot.slane %v1570_v61, 5  ;;  %v1559_v8 = vor.u32 %v1558_v2, %v1555_v1  ;;  %v1578_v10 = vrot.slane %v1576_v62, 5  ;;  %v1581_v20 = vshrl.u32 %v2017_v11, 16  ;;  %v2024_v39 = vld [vmem:[%s2352_s17 + $0x44] sm:$0x1] }
  0x43   : > { %2140 = vmatmul.mubr.msk.bf16.gmra.mxu1 %vm381_vm1, %v1970_v46  ;;  %v1537_v7 = vsel %vm2382_vm4, %v1532_v0, %v1536_v48  ;;  %v1551_v12 = vsel %vm2382_vm4, %v1546_v3, %v1550_v53  ;;  %v1584_v21 = vshll.u32 %v2017_v11, 16  ;;  %v1590_v24 = vshll.u32 %v2018_v15, 16  ;;  %v2233_v47 = vld [vmem:[%s2334_s10 + $0x38] ss:$8 sps:$4 sm:$0xff]  }
  0x44   : > { %2155 = vmatprep.mubr.msk.bf16.mxu1 %vm381_vm1, %v2230_v32  ;;  %v1573_v13 = vor.u32 %v1572_v5, %v1569_v4  ;;  %v2026_v18 = vcombine.low %v1537_v7, %v1551_v12  ;;  %v1560_v19 = vrot.slane %v1559_v8, 4  ;;  %v1583_v30 = vrot.slane %v1581_v20, 4 }
  0x45   : > { %2146 = vmatmul.mubr.msk.bf16.vlgmr.msra.gmra.mxu0 %vm381_vm1, %v2227_v16  ;;  %v2019_v16 = vld [vmem:[%s2352_s17 + $0x30] sm:$0xf]  ;;  %v1586_v31 = vrot.slane %v1584_v21, 5  ;;  %v1604_v32 = vshll.u32 %v2020_v17, 16  ;;  %v1592_v35 = vrot.slane %v1590_v24, 5  ;;  %v1609_v42 = vshrl.u32 %v2021_v22, 16 }
  0x46   : > { %2164 = vmatpush3.bf16.msra.mxu0 %v1663_v25  ;;  %2149 = vmatprep.mubr.msk.bf16.mxu0 %vm381_vm1, %v2228_v29  ;;  %v1574_v23 = vrot.slane %v1573_v13, 4  ;;  %v1595_v25 = vshrl.u32 %v2019_v16, 16  ;;  %v1598_v26 = vshll.u32 %v2019_v16, 16  ;;  %v1565_v29 = vsel %vm2382_vm4, %v1560_v19, %v1564_v9 }
  0x47   : > { %v1587_v40 = vor.u32 %v1586_v31, %v1583_v30  ;;  %v1606_v41 = vrot.slane %v1604_v32, 5  ;;  %v1612_v14 = vshll.u32 %v2021_v22, 16  ;;  %v1618_v45 = vshll.u32 %v2022_v28, 16 }
  0x48   : > { %v1579_v34 = vsel %vm2382_vm4, %v1574_v23, %v1578_v10  ;;  %v1597_v36 = vrot.slane %v1595_v25, 4  ;;  %v1600_v37 = vrot.slane %v1598_v26, 5  ;;  %v1623_v46 = vshrl.u32 %v2023_v33, 16 }
  0x49   : > { %v2027_v27 = vcombine.low %v1565_v29, %v1579_v34  ;;  %v1588_v48 = vrot.slane %v1587_v40, 4  ;;  %v1611_v49 = vrot.slane %v1609_v42, 4  ;;  %v1626_v50 = vshll.u32 %v2023_v33, 16 }
  0x4a   : > { %v1601_v44 = vor.u32 %v1600_v37, %v1597_v36  ;;  %v1614_v53 = vrot.slane %v1612_v14, 5  ;;  %v1625_v54 = vrot.slane %v1623_v46, 4  ;;  %v1620_v58 = vrot.slane %v1618_v45, 5 }
  0x4b   : > { %2156 = vmatmul.mubr.msk.bf16.vlgmr.msra.gmra.mxu1 %vm381_vm1, %v2231_v63  ;;  %v1593_v38 = vsel %vm2382_vm4, %v1588_v48, %v1592_v35  ;;  %v1628_v55 = vrot.slane %v1626_v50, 5  ;;  %vm1769_vm5 = vcmask 27648  }
  0x4c   : > { %2159 = vmatprep.mubr.msk.bf16.mxu1 %vm381_vm1, %v2232_v6  ;;  %v1602_v52 = vrot.slane %v1601_v44, 4  ;;  %v1615_v57 = vor.u32 %v1614_v53, %v1611_v49 }
  0x4d   : > { %2150 = vmatmul.mubr.msk.bf16.gmra.mxu0 %vm381_vm1, %v2229_v51  ;;  %v1632_v51 = vshll.u32 %v2024_v39, 16  ;;  %v1629_v60 = vor.u32 %v1628_v55, %v1625_v54 }
  0x4e   : > { %2165 = vmatprep.mubr.msk.bf16.mxu0 %vm381_vm1, %v2026_v18  ;;  %v1607_v56 = vsel %vm2382_vm4, %v1602_v52, %v1606_v41  ;;  %v1616_v62 = vrot.slane %v1615_v57, 4 }
  0x4f   : > { %v2028_v59 = vcombine.low %v1593_v38, %v1607_v56  ;;  %v1634_v61 = vrot.slane %v1632_v51, 5  ;;  %v1630_v63 = vrot.slane %v1629_v60, 4 }
  0x50   : > { %v1621_v0 = vsel %vm2382_vm4, %v1616_v62, %v1620_v58 }
  0x51   : > { %v1635_v1 = vsel %vm2382_vm4, %v1630_v63, %v1634_v61 }
  0x52   : > { %v2029_v2 = vcombine.low %v1621_v0, %v1635_v1 }
  0x53   : > { %2160 = vmatmul.mubr.msk.bf16.gmra.mxu1 %vm381_vm1, %v2233_v47 }
  0x55   : > { %2166 = vmatmul.mubr.msk.bf16.vlgmr.msra.gmra.mxu0 %vm381_vm1, %v2027_v27 }
  0x56   : > { %2169 = vmatprep.mubr.msk.bf16.mxu0 %vm381_vm1, %v2028_v59 }
  0x5d   : > { %2170 = vmatmul.mubr.msk.bf16.gmra.mxu0 %vm381_vm1, %v2029_v2 }
  0xd2   : > { %v2087_v5 = vpop.f32.mrf.mxu0 }
  0xd3   : > { %v2091_v3 = vpop.f32.mrf.mxu1 }
  0xd4   : > { %v432_v8 = vpop.f32.mrf.mxu0 }
  0xd5   : > { %v448_v4 = vpop.f32.mrf.mxu1 }
  0xd6   : > { %v2088_v11 = vpop.f32.mrf.mxu0 }
  0xd7   : > { %v2559_v6 = vpop.f32.mrf.mxu1 }
  0xd8   : > { %v435_v15 = vpop.f32.mrf.mxu0 }
  0xd9   : > { %v2561_v7 = vpop.f32.mrf.mxu1 }
  0xdb   : > { %v2097_v9 = vpop.f32.mrf.mxu1 }
  0xdc   : > { %v541_v14 = vadd.f32 %v2097_v9, %v2087_v5 }
  0xdd   : > { %v532_v10 = vpop.f32.mrf.mxu1 }
  0xde   : > { %v533_v47 = vadd.f32 %v532_v10, %v432_v8 }
  0xdf   : > { %v2098_v12 = vpop.f32.mrf.mxu1 }
  0xe0   : > { %v544_v50 = vadd.f32 %v2098_v12, %v2088_v11 }
  0xe1   : > { %v535_v13 = vpop.f32.mrf.mxu1 }
  0xe2   : > { %v536_v54 = vadd.f32 %v535_v13, %v435_v15 }
  0xe3   : > { %v2101_v16 = vpop.f32.mrf.mxu1  ;;  %v2107_v43 = vpop.f32.mrf.mxu0 }
  0xe4   : > { %v790_v49 = vadd.f32 %v2107_v43, %v541_v14  ;;  %v557_v59 = vadd.f32 %v2101_v16, %v2091_v3 }
  0xe5   : > { %v548_v17 = vpop.f32.mrf.mxu1  ;;  %v757_v18 = vpop.f32.mrf.mxu0 }
  0xe6   : > { %v788_v53 = vadd.f32 %v757_v18, %v533_v47  ;;  %v549_v1 = vadd.f32 %v548_v17, %v448_v4 }
  0xe7   : > { %v2102_v19 = vpop.f32.mrf.mxu1  ;;  %v2108_v20 = vpop.f32.mrf.mxu0 }
  0xe8   : > { %v791_v56 = vadd.f32 %v2108_v20, %v544_v50  ;;  %v560_v12 = vadd.f32 %v2102_v19, %v2559_v6 }
  0xe9   : > { %v551_v21 = vpop.f32.mrf.mxu1  ;;  %v760_v22 = vpop.f32.mrf.mxu0 }
  0xea   : > { %v789_v61 = vadd.f32 %v760_v22, %v536_v54  ;;  %v552_v3 = vadd.f32 %v551_v21, %v2561_v7 }
  0xeb   : > { %v2117_v23 = vpop.f32.mrf.mxu1 }
  0xec   : > { %v910_v38 = vadd.f32 %v2117_v23, %v790_v49 }
  0xed   : > { %v877_v24 = vpop.f32.mrf.mxu1  ;;  %v2111_v25 = vpop.f32.mrf.mxu0 }
  0xee   : > { %v908_v57 = vadd.f32 %v877_v24, %v788_v53  ;;  %v794_v11 = vadd.f32 %v2111_v25, %v557_v59 }
  0xef   : > { %v2118_v26 = vpop.f32.mrf.mxu1  ;;  %v773_v28 = vpop.f32.mrf.mxu0 }
  0xf0   : > { %v911_v63 = vadd.f32 %v2118_v26, %v791_v56  ;;  %v792_v20 = vadd.f32 %v773_v28, %v549_v1 }
  0xf1   : > { %v880_v29 = vpop.f32.mrf.mxu1  ;;  %v2112_v30 = vpop.f32.mrf.mxu0 }
  0xf2   : > { %v909_v8 = vadd.f32 %v880_v29, %v789_v61  ;;  %v795_v26 = vadd.f32 %v2112_v30, %v560_v12  ;;  %v2575_v30 = vld [vmem:[%s2623_s5] ss:$0 sm:$0xff] }
  0xf3   : > { %v2121_v31 = vpop.f32.mrf.mxu1  ;;  %v776_v32 = vpop.f32.mrf.mxu0 }
  0xf4   : > { %v914_v16 = vadd.f32 %v2121_v31, %v794_v11  ;;  %v793_v19 = vadd.f32 %v776_v32, %v552_v3 }
  0xf5   : > { %v893_v33 = vpop.f32.mrf.mxu1  ;;  %v2127_v34 = vpop.f32.mrf.mxu0 }
  0xf6   : > { %v1030_v62 = vadd.f32 %v2127_v34, %v910_v38  ;;  %v912_v29 = vadd.f32 %v893_v33, %v792_v20 }
  0xf7   : > { %v2122_v35 = vpop.f32.mrf.mxu1  ;;  %v997_v36 = vpop.f32.mrf.mxu0 }
  0xf8   : > { %v1028_v5 = vadd.f32 %v997_v36, %v908_v57 }
  0xf9   : > { %v2128_v37 = vpop.f32.mrf.mxu0  ;;  %v2563_v39 = vpop.f32.mrf.mxu1 }
  0xfa   : > { %v1031_v15 = vadd.f32 %v2128_v37, %v911_v63 }
  0xfb   : > { %v1000_v27 = vpop.f32.mrf.mxu0  ;;  %v2137_v41 = vpop.f32.mrf.mxu1 }
  0xfc   : > { %v1260_v9 = vadd.f32 %v2137_v41, %v1030_v62  ;;  %v1029_v23 = vadd.f32 %v1000_v27, %v909_v8  ;;  %v913_v27 = vadd.f32 %v2563_v39, %v793_v19 }
  0xfd   : > { %v2131_v40 = vpop.f32.mrf.mxu0  ;;  %v1227_v44 = vpop.f32.mrf.mxu1 }
  0xfe   : > { %v1258_v43 = vadd.f32 %v1227_v44, %v1028_v5  ;;  %v1034_v37 = vadd.f32 %v2131_v40, %v914_v16  ;;  %v915_v44 = vadd.f32 %v2122_v35, %v795_v26 }
  0xff   : > { %v1013_v42 = vpop.f32.mrf.mxu0  ;;  %v2138_v46 = vpop.f32.mrf.mxu1 }
 0x100   : > { %v1261_v4 = vadd.f32 %v2138_v46, %v1031_v15  ;;  %v1032_v31 = vadd.f32 %v1013_v42, %v912_v29 }
 0x101   : > { %v2565_v45 = vpop.f32.mrf.mxu0  ;;  %v1230_v51 = vpop.f32.mrf.mxu1 }
 0x102   : > { %v1259_v25 = vadd.f32 %v1230_v51, %v1029_v23  ;;  %v1035_v35 = vadd.f32 %v2565_v45, %v915_v44 }
 0x103   : > { %v2567_v48 = vpop.f32.mrf.mxu0  ;;  %v2141_v58 = vpop.f32.mrf.mxu1 }
 0x104   : > { %v1264_v46 = vadd.f32 %v2141_v58, %v1034_v37  ;;  %v1033_v54 = vadd.f32 %v2567_v48, %v913_v27 }
 0x105   : > { %v2147_v52 = vpop.f32.mrf.mxu0  ;;  %v1243_v0 = vpop.f32.mrf.mxu1 }
 0x106   : > { %v1382_v24 = vadd.f32 %v2147_v52, %v1260_v9  ;;  %v1262_v50 = vadd.f32 %v1243_v0, %v1032_v31 }
 0x107   : > { %v1349_v55 = vpop.f32.mrf.mxu0  ;;  %v2142_v10 = vpop.f32.mrf.mxu1 }
 0x108   : > { %v1380_v36 = vadd.f32 %v1349_v55, %v1258_v43  ;;  %v1265_v55 = vadd.f32 %v2142_v10, %v1035_v35 }
 0x109   : > { %v2148_v60 = vpop.f32.mrf.mxu0  ;;  %v1246_v18 = vpop.f32.mrf.mxu1 }
 0x10a   : > { %v1383_v28 = vadd.f32 %v2148_v60, %v1261_v4  ;;  %v1263_v45 = vadd.f32 %v1246_v18, %v1033_v54 }
 0x10b   : > { %v1352_v2 = vpop.f32.mrf.mxu0  ;;  %v2157_v17 = vpop.f32.mrf.mxu1 }
 0x10c   : > { %v1502_v41 = vadd.f32 %v2157_v17, %v1382_v24  ;;  %v1381_v33 = vadd.f32 %v1352_v2, %v1259_v25 }
 0x10d   : > { %v2151_v13 = vpop.f32.mrf.mxu0  ;;  %v1469_v6 = vpop.f32.mrf.mxu1 }
 0x10e   : > { %v1500_v7 = vadd.f32 %v1469_v6, %v1380_v36  ;;  %v1386_v38 = vadd.f32 %v2151_v13, %v1264_v46 }
 0x10f   : > { %v1365_v22 = vpop.f32.mrf.mxu0  ;;  %v2158_v21 = vpop.f32.mrf.mxu1 }
 0x110   : > { %v1503_v32 = vadd.f32 %v2158_v21, %v1383_v28  ;;  %v1384_v61 = vadd.f32 %v1365_v22, %v1262_v50 }
 0x111   : > { %v2152_v34 = vpop.f32.mrf.mxu0  ;;  %v1472_v40 = vpop.f32.mrf.mxu1 }
 0x112   : > { %v1501_v39 = vadd.f32 %v1472_v40, %v1381_v33  ;;  %v1387_v8 = vadd.f32 %v2152_v34, %v1265_v55 }
 0x113   : > { %v1368_v14 = vpop.f32.mrf.mxu0  ;;  %v2161_v53 = vpop.f32.mrf.mxu1 }
 0x114   : > { %v1506_v48 = vadd.f32 %v2161_v53, %v1386_v38  ;;  %v1385_v13 = vadd.f32 %v1368_v14, %v1263_v45 }
 0x115   : > { %v2167_v47 = vpop.f32.mrf.mxu0  ;;  %v1485_v60 = vpop.f32.mrf.mxu1 }
 0x116   : > { %v1732_v49 = vadd.f32 %v2167_v47, %v1502_v41  ;;  %v1504_v12 = vadd.f32 %v1485_v60, %v1384_v61 }
 0x117   : > { %v1699_v51 = vpop.f32.mrf.mxu0  ;;  %v2162_v5 = vpop.f32.mrf.mxu1 }
 0x118   : > { %v1747_v42 = vadd.f32 %v2575_v30, %v1732_v49  ;;  %v1730_v52 = vadd.f32 %v1699_v51, %v1500_v7  ;;  %v1507_v16 = vadd.f32 %v2162_v5, %v1387_v8 }
 0x119   : > { %v2168_v56 = vpop.f32.mrf.mxu0  ;;  %v1488_v43 = vpop.f32.mrf.mxu1 }
 0x11a   : > { %v1755_v57 = vmax.f32 %v1747_v42, 0.0  ;;  %v1745_v58 = vadd.f32 %v2575_v30, %v1730_v52  ;;  %v1733_v59 = vadd.f32 %v2168_v56, %v1503_v32  ;;  %v1505_v17 = vadd.f32 %v1488_v43, %v1385_v13 }
 0x11b   : > { %v1702_v62 = vpop.f32.mrf.mxu0 }
 0x11c   : > { %v1763_v63 = vpack.c.bf16 %v1755_v57, %v1755_v57  ;;  %v1753_v0 = vmax.f32 %v1745_v58, 0.0  ;;  %v1748_v1 = vadd.f32 %v2575_v30, %v1733_v59  ;;  %v1731_v2 = vadd.f32 %v1702_v62, %v1501_v39 }
 0x11d   : > { %v2171_v15 = vpop.f32.mrf.mxu0 }
 0x11e   : > { %1772 = vst.msk [vmem:[%s2585_s21 + $0x8] sm:$0xf] %vm1769_vm5, %v1763_v63  ;;  %v1761_v9 = vpack.c.bf16 %v1753_v0, %v1753_v0  ;;  %v1756_v10 = vmax.f32 %v1748_v1, 0.0  ;;  %v1746_v11 = vadd.f32 %v2575_v30, %v1731_v2  ;;  %v1736_v3 = vadd.f32 %v2171_v15, %v1506_v48 }
 0x11f   : > { %v1715_v22 = vpop.f32.mrf.mxu0 }
 0x120   : > { %1770 = vst.msk [vmem:[%s2585_s21] sm:$0xf] %vm1769_vm5, %v1761_v9  ;;  %v1764_v18 = vpack.c.bf16 %v1756_v10, %v1756_v10  ;;  %v1754_v20 = vmax.f32 %v1746_v11, 0.0  ;;  %v1751_v24 = vadd.f32 %v2575_v30, %v1736_v3  ;;  %v1734_v4 = vadd.f32 %v1715_v22, %v1504_v12 }
 0x121   : > { %v2172_v26 = vpop.f32.mrf.mxu0 }
 0x122   : > { %1773 = vst.msk [vmem:[%s2585_s21 + $0xc] sm:$0xf] %vm1769_vm5, %v1764_v18  ;;  %v1762_v23 = vpack.c.bf16 %v1754_v20, %v1754_v20  ;;  %v1759_v29 = vmax.f32 %v1751_v24, 0.0  ;;  %v1749_v34 = vadd.f32 %v2575_v30, %v1734_v4  ;;  %v1737_v36 = vadd.f32 %v2172_v26, %v1507_v16 }
 0x123   : > { %v1718_v25 = vpop.f32.mrf.mxu0 }
 0x124   : > { %1771 = vst.msk [vmem:[%s2585_s21 + $0x4] sm:$0xf] %vm1769_vm5, %v1762_v23  ;;  %v1767_v41 = vpack.c.bf16 %v1759_v29, %v1759_v29  ;;  %v1757_v6 = vmax.f32 %v1749_v34, 0.0  ;;  %v1752_v19 = vadd.f32 %v2575_v30, %v1737_v36  ;;  %v1735_v37 = vadd.f32 %v1718_v25, %v1505_v17 }
 0x126   : > { %1776 = vst.msk [vmem:[%s2585_s21 + $0x18] sm:$0xf] %vm1769_vm5, %v1767_v41  ;;  %v1765_v44 = vpack.c.bf16 %v1757_v6, %v1757_v6  ;;  %v1760_v14 = vmax.f32 %v1752_v19, 0.0  ;;  %v1750_v28 = vadd.f32 %v2575_v30, %v1735_v37 }
 0x128   : > { %1774 = vst.msk [vmem:[%s2585_s21 + $0x10] sm:$0xf] %vm1769_vm5, %v1765_v44  ;;  %v1768_v7 = vpack.c.bf16 %v1760_v14, %v1760_v14  ;;  %v1758_v21 = vmax.f32 %v1750_v28, 0.0 }
 0x12a   : > { %1777 = vst.msk [vmem:[%s2585_s21 + $0x1c] sm:$0xf] %vm1769_vm5, %v1768_v7  ;;  %v1766_v31 = vpack.c.bf16 %v1758_v21, %v1758_v21 }
 0x12c   : > { %1775 = vst.msk [vmem:[%s2585_s21 + $0x14] sm:$0xf] %vm1769_vm5, %v1766_v31 }
 0x12d PF: > { %s16_s23 = sadd.s32 1, %s2256_s23   ;;  %s2627_s21 = smov %s2252_s22 }
 0x12e   : > { %p13_p5 = scmp.ge.s32.totalorder %s16_s23, 4   ;;  %s2628_s22 = smov %s2630_s24 }
 0x130   :  { %15 = sbr.rel (!%p13_p5) target bundleno = 2 (0x2), region = 97 }

</bundles_post_ra>
